<compile_context>
chip_gen: v7x
topology: tpu7x:2x2x1
jax: 0.10.0
libtpu: 0.0.40
codegen_flags: <defaults>
</compile_context>

<pallas_src>
import functools

import jax
import jax.numpy as jnp
from jax import lax
from jax.experimental import pallas as pl
from jax.experimental.pallas import tpu as pltpu


# ----------------------------- Pallas kernels -----------------------------

def _attn_kernel(x_ref, w_ref, b_ref, tk_ref, tv_ref, mrow_ref, mcol_ref, o_ref,
                 *, nhead, head_size):
    """Fused QKV projection + time-aware multi-head attention, batch-0 rows only."""
    D = x_ref.shape[2]
    hs = head_size

    x = x_ref[0]                                                        # (L, D) batch-0 rows
    qkv = jnp.dot(x, w_ref[...], preferred_element_type=jnp.float32) + b_ref[...]  # (L, 3D)
    tk = tk_ref[0]                                                      # (L, L, D) batch-0
    tv = tv_ref[0]

    scale = jnp.float32(1.0 / (hs ** 0.5))
    neg = jnp.float32(-2.0 ** 32 + 1)

    # time-K bias: weight relative-time keys by the full query row ONCE (shared
    # across all heads); per head only a cheap lane-axis reduce remains.
    q_all = qkv[:, :D]                                                  # (L, D)
    tkq = tk * q_all[:, None, :]                                        # (L, L, D) single VPU pass

    for h in range(nhead):                                              # static unroll
        q = qkv[:, h * hs:(h + 1) * hs]                                 # (L, hs)
        k = qkv[:, D + h * hs:D + (h + 1) * hs]
        v = qkv[:, 2 * D + h * hs:2 * D + (h + 1) * hs]

        s = jnp.dot(q, k.T, preferred_element_type=jnp.float32)         # MXU (L, L)
        s = s + jnp.sum(tkq[:, :, h * hs:(h + 1) * hs], axis=-1)        # XLU lane reduce
        s = s * scale

        # Padding mask (reference quirk): head h uses batch (h*bsz)//nhead's
        # padding row; (L, L) outer product built in-kernel (trivial VPU work).
        mrow = mrow_ref[h:h + 1, :]                                     # (1, L)
        mcol = mcol_ref[:, h:h + 1]                                     # (L, 1)
        s = jnp.where(mcol * mrow > 0.5, neg, s)

        s = s - jnp.max(s, axis=-1, keepdims=True)
        e = jnp.exp(s)
        p = e * pl.reciprocal(jnp.sum(e, axis=-1, keepdims=True), approx=True)  # EUP slot

        out = jnp.dot(p, v, preferred_element_type=jnp.float32)         # MXU (L, hs)
        tvh = tv[:, :, h * hs:(h + 1) * hs]
        out = out + jnp.sum(p[:, :, None] * tvh, axis=1)                # time-V bias
        o_ref[:, h * hs:(h + 1) * hs] = out                             # sa0 slab (L, D)


def _ffn_kernel(x_ref, sa_ref, w1_ref, b1_ref, w2_ref, b2_ref,
                g1_ref, be1_ref, g2_ref, be2_ref, o_ref, *, eps):
    """residual(sa0) + LayerNorm1 + FFN + residual + LayerNorm2 for one batch row-tile."""
    h = x_ref[0] + sa_ref[...]                      # sa0 broadcast over batch (reference quirk)
    mu = jnp.mean(h, axis=-1, keepdims=True)
    var = jnp.mean((h - mu) ** 2, axis=-1, keepdims=True)
    x1 = (h - mu) * lax.rsqrt(var + eps) * g1_ref[...] + be1_ref[...]

    ff = jnp.dot(x1, w1_ref[...], preferred_element_type=jnp.float32) + b1_ref[...]
    ff = jnp.maximum(ff, 0.0)                       # ReLU
    ff = jnp.dot(ff, w2_ref[...], preferred_element_type=jnp.float32) + b2_ref[...]

    h2 = x1 + ff
    mu2 = jnp.mean(h2, axis=-1, keepdims=True)
    var2 = jnp.mean((h2 - mu2) ** 2, axis=-1, keepdims=True)
    o_ref[0] = (h2 - mu2) * lax.rsqrt(var2 + eps) * g2_ref[...] + be2_ref[...]


# ------------------------------- wrapper -----------------------------------

def time_aware_encoder_layer(src, time_K, time_V, key_padding_mask, params,
                             *, nhead, eps=1e-5):
    bsz, L, D = src.shape
    hs = D // nhead
    F = params["w1"].shape[1]

    # Fused QKV weight (D, 3D): one resident MXU weight instead of three.
    wqkv = jnp.concatenate([params["wq"], params["wk"], params["wv"]], axis=1)
    bqkv = jnp.concatenate([params["bq"], params["bk"], params["bv"]], axis=1)

    # Per-head padding-mask rows (tiny). Only attention rows h*bsz feed sa[0];
    # the reference masks them with batch (h*bsz)//nhead.
    head_batch = (jnp.arange(nhead) * bsz) // nhead
    mrow = key_padding_mask.astype(jnp.float32)[head_batch]     # (nhead, L)
    mcol = mrow.T                                               # (L, nhead)

    # QKV + attention, batch-0 only (selected by index_map, no JAX transposes).
    sa0 = pl.pallas_call(
        functools.partial(_attn_kernel, nhead=nhead, head_size=hs),
        out_shape=jax.ShapeDtypeStruct((L, D), jnp.float32),
        grid=(1,),
        in_specs=[
            pl.BlockSpec((1, L, D), lambda i: (0, 0, 0)),          # src: batch-0 rows only
            pl.BlockSpec((D, 3 * D), lambda i: (0, 0)),            # fused QKV weight (resident)
            pl.BlockSpec((1, 3 * D), lambda i: (0, 0)),
            pl.BlockSpec((1, L, L, D), lambda i: (0, 0, 0, 0)),    # time_K batch 0 via index_map
            pl.BlockSpec((1, L, L, D), lambda i: (0, 0, 0, 0)),    # time_V batch 0 via index_map
            pl.BlockSpec((nhead, L), lambda i: (0, 0)),            # per-head mask rows
            pl.BlockSpec((L, nhead), lambda i: (0, 0)),            # same, column layout
        ],
        out_specs=pl.BlockSpec((L, D), lambda i: (0, 0)),
        compiler_params=pltpu.CompilerParams(
            dimension_semantics=("arbitrary",),
            vmem_limit_bytes=48 * 1024 * 1024),
    )(src, wqkv, bqkv, time_K, time_V, mrow, mcol)

    # FFN + norms: grid over batch rows, weights resident, sa0 replayed by
    # index_map for every tile (no jnp.tile / extra HBM round trip).
    out = pl.pallas_call(
        functools.partial(_ffn_kernel, eps=eps),
        out_shape=jax.ShapeDtypeStruct((bsz, L, D), jnp.float32),
        grid=(bsz,),
        in_specs=[
            pl.BlockSpec((1, L, D), lambda b: (b, 0, 0)),
            pl.BlockSpec((L, D), lambda b: (0, 0)),
            pl.BlockSpec((D, F), lambda b: (0, 0)),
            pl.BlockSpec((1, F), lambda b: (0, 0)),
            pl.BlockSpec((F, D), lambda b: (0, 0)),
            pl.BlockSpec((1, D), lambda b: (0, 0)),
            pl.BlockSpec((1, D), lambda b: (0, 0)),
            pl.BlockSpec((1, D), lambda b: (0, 0)),
            pl.BlockSpec((1, D), lambda b: (0, 0)),
            pl.BlockSpec((1, D), lambda b: (0, 0)),
        ],
        out_specs=pl.BlockSpec((1, L, D), lambda b: (b, 0, 0)),
        compiler_params=pltpu.CompilerParams(
            dimension_semantics=("parallel",),
            vmem_limit_bytes=48 * 1024 * 1024),
    )(src, sa0, params["w1"], params["b1"], params["w2"], params["b2"],
      params["g1"], params["beta1"], params["g2"], params["beta2"])
    return out


# --------------------------- pure-JAX reference -----------------------------

def _reference(src, time_K, time_V, kpm, params, *, nhead, eps=1e-5):
    bsz, L, D = src.shape
    hs = D // nhead
    x = src
    Q = x @ params["wq"] + params["bq"][0]
    K = x @ params["wk"] + params["bk"][0]
    V = x @ params["wv"] + params["bv"][0]

    def split_heads(t, axis):
        return jnp.concatenate(jnp.split(t, nhead, axis=axis), axis=0)

    Q_, K_, V_ = split_heads(Q, 2), split_heads(K, 2), split_heads(V, 2)
    tK_ = split_heads(time_K, 3)
    tV_ = split_heads(time_V, 3)

    aw = jnp.einsum("bid,bjd->bij", Q_, K_)
    aw = aw + jnp.einsum("bijd,bid->bij", tK_, Q_)
    aw = aw / (hs ** 0.5)
    kpm_rep = jnp.repeat(kpm.astype(jnp.float32), nhead, axis=0)
    am = (kpm_rep[:, :, None] * kpm_rep[:, None, :]) > 0
    aw = jnp.where(am, jnp.float32(-2.0 ** 32 + 1), aw)
    aw = jax.nn.softmax(aw, axis=-1)
    out = jnp.einsum("bij,bjd->bid", aw, V_)
    out = out + jnp.einsum("bij,bijd->bid", aw, tV_)
    out = jnp.concatenate(jnp.split(out, nhead, axis=0), axis=2)   # (bsz, L, D)
    sa0 = out[0]

    def ln(h, g, b):
        mu = jnp.mean(h, -1, keepdims=True)
        var = jnp.mean((h - mu) ** 2, -1, keepdims=True)
        return (h - mu) / jnp.sqrt(var + eps) * g + b

    x1 = ln(x + sa0[None], params["g1"][0], params["beta1"][0])
    ff = jnp.maximum(x1 @ params["w1"] + params["b1"][0], 0.0) @ params["w2"] + params["b2"][0]
    return ln(x1 + ff, params["g2"][0], params["beta2"][0])


# --------------------------------- main -------------------------------------

if __name__ == "__main__":
    bsz, L, D, nhead, dff = 2, 8, 32, 4, 64

    key = jax.random.PRNGKey(0)
    ks = jax.random.split(key, 16)

    src = jax.random.normal(ks[0], (bsz, L, D), jnp.float32)
    time_K = jax.random.normal(ks[1], (bsz, L, L, D), jnp.float32) * 0.1
    time_V = jax.random.normal(ks[2], (bsz, L, L, D), jnp.float32) * 0.1
    valid = jnp.array([5, 7])
    kpm = jnp.arange(L)[None, :] >= valid[:, None]          # True = padding

    def lin(k, fan_in, fan_out):
        return jax.random.normal(k, (fan_in, fan_out), jnp.float32) / (fan_in ** 0.5)

    params = dict(
        wq=lin(ks[3], D, D), wk=lin(ks[4], D, D), wv=lin(ks[5], D, D),
        bq=jax.random.normal(ks[6], (1, D), jnp.float32) * 0.01,
        bk=jax.random.normal(ks[7], (1, D), jnp.float32) * 0.01,
        bv=jax.random.normal(ks[8], (1, D), jnp.float32) * 0.01,
        w1=lin(ks[9], D, dff),
        b1=jax.random.normal(ks[10], (1, dff), jnp.float32) * 0.01,
        w2=lin(ks[11], dff, D),
        b2=jax.random.normal(ks[12], (1, D), jnp.float32) * 0.01,
        g1=jnp.ones((1, D), jnp.float32), beta1=jnp.zeros((1, D), jnp.float32),
        g2=jnp.ones((1, D), jnp.float32), beta2=jnp.zeros((1, D), jnp.float32),
    )

    ref = _reference(src, time_K, time_V, kpm, params, nhead=nhead)

    fn = jax.jit(functools.partial(time_aware_encoder_layer, nhead=nhead))
    out = jax.block_until_ready(fn(src, time_K, time_V, kpm, params))

    # approx reciprocal in the softmax denominator -> slightly relaxed tolerance
    # vs the exact f32 reference.
    assert out.shape == (bsz, L, D), f"bad shape {out.shape}"
    assert bool(jnp.allclose(out, ref, atol=2e-2, rtol=2e-2)), "kernel/reference mismatch"
    print("KERNEL_OK")
</pallas_src>

<mosaic_0001>
module attributes {stable_mosaic.version = 11 : i64} {
  func.func @_ffn_kernel(%arg0: i32, %arg1: memref<1x8x32xf32, #tpu.memory_space<vmem>>, %arg2: memref<8x32xf32, #tpu.memory_space<vmem>>, %arg3: memref<32x64xf32, #tpu.memory_space<vmem>>, %arg4: memref<1x64xf32, #tpu.memory_space<vmem>>, %arg5: memref<64x32xf32, #tpu.memory_space<vmem>>, %arg6: memref<1x32xf32, #tpu.memory_space<vmem>>, %arg7: memref<1x32xf32, #tpu.memory_space<vmem>>, %arg8: memref<1x32xf32, #tpu.memory_space<vmem>>, %arg9: memref<1x32xf32, #tpu.memory_space<vmem>>, %arg10: memref<1x32xf32, #tpu.memory_space<vmem>>, %arg11: memref<1x8x32xf32, #tpu.memory_space<vmem>>) attributes {dimension_semantics = [#tpu.dimension_semantics<parallel>], iteration_bounds = array<i64: 2>, scalar_prefetch = 0 : i64, scratch_operands = 0 : i64, tpu.core_type = #tpu.core_type<tc>, window_params = [{transform_indices = @transform_0, window_bounds = array<i64: 1, 8, 32>}, {pipeline_mode = #tpu.pipeline_mode<synchronous>, transform_indices = @transform_1, window_bounds = array<i64: 8, 32>}, {pipeline_mode = #tpu.pipeline_mode<synchronous>, transform_indices = @transform_2, window_bounds = array<i64: 32, 64>}, {pipeline_mode = #tpu.pipeline_mode<synchronous>, transform_indices = @transform_3, window_bounds = array<i64: 1, 64>}, {pipeline_mode = #tpu.pipeline_mode<synchronous>, transform_indices = @transform_4, window_bounds = array<i64: 64, 32>}, {pipeline_mode = #tpu.pipeline_mode<synchronous>, transform_indices = @transform_5, window_bounds = array<i64: 1, 32>}, {pipeline_mode = #tpu.pipeline_mode<synchronous>, transform_indices = @transform_6, window_bounds = array<i64: 1, 32>}, {pipeline_mode = #tpu.pipeline_mode<synchronous>, transform_indices = @transform_7, window_bounds = array<i64: 1, 32>}, {pipeline_mode = #tpu.pipeline_mode<synchronous>, transform_indices = @transform_8, window_bounds = array<i64: 1, 32>}, {pipeline_mode = #tpu.pipeline_mode<synchronous>, transform_indices = @transform_9, window_bounds = array<i64: 1, 32>}, {transform_indices = @transform_10, window_bounds = array<i64: 1, 8, 32>}]} {
    %c0 = arith.constant 0 : index
    %c0_0 = arith.constant 0 : index
    %c0_1 = arith.constant 0 : index
    %0 = vector.load %arg1[%c0, %c0_0, %c0_1] : memref<1x8x32xf32, #tpu.memory_space<vmem>>, vector<1x8x32xf32>
    %1 = vector.shape_cast %0 : vector<1x8x32xf32> to vector<8x32xf32>
    %c0_2 = arith.constant 0 : index
    %c0_3 = arith.constant 0 : index
    %2 = vector.load %arg2[%c0_2, %c0_3] : memref<8x32xf32, #tpu.memory_space<vmem>>, vector<8x32xf32>
    %3 = arith.addf %1, %2 : vector<8x32xf32>
    %cst = arith.constant dense<0.000000e+00> : vector<8xf32>
    %4 = vector.multi_reduction <add>, %3, %cst [1] : vector<8x32xf32> to vector<8xf32>
    %5 = vector.shape_cast %4 : vector<8xf32> to vector<8x1xf32>
    %cst_4 = arith.constant 3.200000e+01 : f32
    %6 = vector.broadcast %cst_4 : f32 to vector<8x1xf32>
    %7 = arith.divf %5, %6 : vector<8x1xf32>
    %8 = vector.broadcast %7 : vector<8x1xf32> to vector<8x32xf32>
    %9 = arith.subf %3, %8 : vector<8x32xf32>
    %10 = arith.mulf %9, %9 : vector<8x32xf32>
    %cst_5 = arith.constant dense<0.000000e+00> : vector<8xf32>
    %11 = vector.multi_reduction <add>, %10, %cst_5 [1] : vector<8x32xf32> to vector<8xf32>
    %12 = vector.shape_cast %11 : vector<8xf32> to vector<8x1xf32>
    %cst_6 = arith.constant 3.200000e+01 : f32
    %13 = vector.broadcast %cst_6 : f32 to vector<8x1xf32>
    %14 = arith.divf %12, %13 : vector<8x1xf32>
    %15 = vector.broadcast %7 : vector<8x1xf32> to vector<8x32xf32>
    %16 = arith.subf %3, %15 : vector<8x32xf32>
    %cst_7 = arith.constant 9.99999974E-6 : f32
    %17 = vector.broadcast %cst_7 : f32 to vector<8x1xf32>
    %18 = arith.addf %14, %17 : vector<8x1xf32>
    %19 = math.rsqrt %18 : vector<8x1xf32>
    %20 = vector.broadcast %19 : vector<8x1xf32> to vector<8x32xf32>
    %21 = arith.mulf %16, %20 : vector<8x32xf32>
    %c0_8 = arith.constant 0 : index
    %c0_9 = arith.constant 0 : index
    %22 = vector.load %arg7[%c0_8, %c0_9] : memref<1x32xf32, #tpu.memory_space<vmem>>, vector<1x32xf32>
    %23 = vector.broadcast %22 : vector<1x32xf32> to vector<8x32xf32>
    %24 = arith.mulf %21, %23 : vector<8x32xf32>
    %c0_10 = arith.constant 0 : index
    %c0_11 = arith.constant 0 : index
    %25 = vector.load %arg8[%c0_10, %c0_11] : memref<1x32xf32, #tpu.memory_space<vmem>>, vector<1x32xf32>
    %26 = vector.broadcast %25 : vector<1x32xf32> to vector<8x32xf32>
    %27 = arith.addf %24, %26 : vector<8x32xf32>
    %c0_12 = arith.constant 0 : index
    %c0_13 = arith.constant 0 : index
    %28 = vector.load %arg3[%c0_12, %c0_13] : memref<32x64xf32, #tpu.memory_space<vmem>>, vector<32x64xf32>
    %cst_14 = arith.constant dense<0.000000e+00> : vector<8x64xf32>
    %29 = tpu.matmul %27, %28, %cst_14 {dimension_numbers = #tpu.dot_dimension_numbers<[1], [0], [0], [1], [0, 0, 1, 1], [], []>} : vector<8x32xf32>, vector<32x64xf32>, vector<8x64xf32> -> vector<8x64xf32>
    %c0_15 = arith.constant 0 : index
    %c0_16 = arith.constant 0 : index
    %30 = vector.load %arg4[%c0_15, %c0_16] : memref<1x64xf32, #tpu.memory_space<vmem>>, vector<1x64xf32>
    %31 = vector.broadcast %30 : vector<1x64xf32> to vector<8x64xf32>
    %32 = arith.addf %29, %31 : vector<8x64xf32>
    %cst_17 = arith.constant 0.000000e+00 : f32
    %33 = vector.broadcast %cst_17 : f32 to vector<8x64xf32>
    %34 = arith.maximumf %32, %33 : vector<8x64xf32>
    %c0_18 = arith.constant 0 : index
    %c0_19 = arith.constant 0 : index
    %35 = vector.load %arg5[%c0_18, %c0_19] : memref<64x32xf32, #tpu.memory_space<vmem>>, vector<64x32xf32>
    %cst_20 = arith.constant dense<0.000000e+00> : vector<8x32xf32>
    %36 = tpu.matmul %34, %35, %cst_20 {dimension_numbers = #tpu.dot_dimension_numbers<[1], [0], [0], [1], [0, 0, 1, 1], [], []>} : vector<8x64xf32>, vector<64x32xf32>, vector<8x32xf32> -> vector<8x32xf32>
    %c0_21 = arith.constant 0 : index
    %c0_22 = arith.constant 0 : index
    %37 = vector.load %arg6[%c0_21, %c0_22] : memref<1x32xf32, #tpu.memory_space<vmem>>, vector<1x32xf32>
    %38 = vector.broadcast %37 : vector<1x32xf32> to vector<8x32xf32>
    %39 = arith.addf %36, %38 : vector<8x32xf32>
    %40 = arith.addf %27, %39 : vector<8x32xf32>
    %cst_23 = arith.constant dense<0.000000e+00> : vector<8xf32>
    %41 = vector.multi_reduction <add>, %40, %cst_23 [1] : vector<8x32xf32> to vector<8xf32>
    %42 = vector.shape_cast %41 : vector<8xf32> to vector<8x1xf32>
    %cst_24 = arith.constant 3.200000e+01 : f32
    %43 = vector.broadcast %cst_24 : f32 to vector<8x1xf32>
    %44 = arith.divf %42, %43 : vector<8x1xf32>
    %45 = vector.broadcast %44 : vector<8x1xf32> to vector<8x32xf32>
    %46 = arith.subf %40, %45 : vector<8x32xf32>
    %47 = arith.mulf %46, %46 : vector<8x32xf32>
    %cst_25 = arith.constant dense<0.000000e+00> : vector<8xf32>
    %48 = vector.multi_reduction <add>, %47, %cst_25 [1] : vector<8x32xf32> to vector<8xf32>
    %49 = vector.shape_cast %48 : vector<8xf32> to vector<8x1xf32>
    %cst_26 = arith.constant 3.200000e+01 : f32
    %50 = vector.broadcast %cst_26 : f32 to vector<8x1xf32>
    %51 = arith.divf %49, %50 : vector<8x1xf32>
    %52 = vector.broadcast %44 : vector<8x1xf32> to vector<8x32xf32>
    %53 = arith.subf %40, %52 : vector<8x32xf32>
    %cst_27 = arith.constant 9.99999974E-6 : f32
    %54 = vector.broadcast %cst_27 : f32 to vector<8x1xf32>
    %55 = arith.addf %51, %54 : vector<8x1xf32>
    %56 = math.rsqrt %55 : vector<8x1xf32>
    %57 = vector.broadcast %56 : vector<8x1xf32> to vector<8x32xf32>
    %58 = arith.mulf %53, %57 : vector<8x32xf32>
    %c0_28 = arith.constant 0 : index
    %c0_29 = arith.constant 0 : index
    %59 = vector.load %arg9[%c0_28, %c0_29] : memref<1x32xf32, #tpu.memory_space<vmem>>, vector<1x32xf32>
    %60 = vector.broadcast %59 : vector<1x32xf32> to vector<8x32xf32>
    %61 = arith.mulf %58, %60 : vector<8x32xf32>
    %c0_30 = arith.constant 0 : index
    %c0_31 = arith.constant 0 : index
    %62 = vector.load %arg10[%c0_30, %c0_31] : memref<1x32xf32, #tpu.memory_space<vmem>>, vector<1x32xf32>
    %63 = vector.broadcast %62 : vector<1x32xf32> to vector<8x32xf32>
    %64 = arith.addf %61, %63 : vector<8x32xf32>
    %c0_32 = arith.constant 0 : index
    %c0_33 = arith.constant 0 : index
    %c0_34 = arith.constant 0 : index
    %65 = vector.load %arg11[%c0_32, %c0_33, %c0_34] : memref<1x8x32xf32, #tpu.memory_space<vmem>>, vector<1x8x32xf32>
    %66 = vector.shape_cast %65 : vector<1x8x32xf32> to vector<8x32xf32>
    %67 = vector.shape_cast %64 : vector<8x32xf32> to vector<1x8x32xf32>
    tpu.vector_store %arg11[%c0_32, %c0_33, %c0_34], %67 {strides = array<i32>} : memref<1x8x32xf32, #tpu.memory_space<vmem>>, vector<1x8x32xf32>,
    return
  }
  func.func @transform_0(%arg0: i32) -> (i32, i32, i32) {
    %c0_i32 = arith.constant 0 : i32
    %c0_i32_0 = arith.constant 0 : i32
    %c0_i32_1 = arith.constant 0 : i32
    return %arg0, %c0_i32, %c0_i32_0 : i32, i32, i32
  }
  func.func @transform_1(%arg0: i32) -> (i32, i32) {
    %c0_i32 = arith.constant 0 : i32
    %c0_i32_0 = arith.constant 0 : i32
    %c0_i32_1 = arith.constant 0 : i32
    return %c0_i32, %c0_i32_0 : i32, i32
  }
  func.func @transform_2(%arg0: i32) -> (i32, i32) {
    %c0_i32 = arith.constant 0 : i32
    %c0_i32_0 = arith.constant 0 : i32
    %c0_i32_1 = arith.constant 0 : i32
    return %c0_i32, %c0_i32_0 : i32, i32
  }
  func.func @transform_3(%arg0: i32) -> (i32, i32) {
    %c0_i32 = arith.constant 0 : i32
    %c0_i32_0 = arith.constant 0 : i32
    %c0_i32_1 = arith.constant 0 : i32
    return %c0_i32, %c0_i32_0 : i32, i32
  }
  func.func @transform_4(%arg0: i32) -> (i32, i32) {
    %c0_i32 = arith.constant 0 : i32
    %c0_i32_0 = arith.constant 0 : i32
    %c0_i32_1 = arith.constant 0 : i32
    return %c0_i32, %c0_i32_0 : i32, i32
  }
  func.func @transform_5(%arg0: i32) -> (i32, i32) {
    %c0_i32 = arith.constant 0 : i32
    %c0_i32_0 = arith.constant 0 : i32
    %c0_i32_1 = arith.constant 0 : i32
    return %c0_i32, %c0_i32_0 : i32, i32
  }
  func.func @transform_6(%arg0: i32) -> (i32, i32) {
    %c0_i32 = arith.constant 0 : i32
    %c0_i32_0 = arith.constant 0 : i32
    %c0_i32_1 = arith.constant 0 : i32
    return %c0_i32, %c0_i32_0 : i32, i32
  }
  func.func @transform_7(%arg0: i32) -> (i32, i32) {
    %c0_i32 = arith.constant 0 : i32
    %c0_i32_0 = arith.constant 0 : i32
    %c0_i32_1 = arith.constant 0 : i32
    return %c0_i32, %c0_i32_0 : i32, i32
  }
  func.func @transform_8(%arg0: i32) -> (i32, i32) {
    %c0_i32 = arith.constant 0 : i32
    %c0_i32_0 = arith.constant 0 : i32
    %c0_i32_1 = arith.constant 0 : i32
    return %c0_i32, %c0_i32_0 : i32, i32
  }
  func.func @transform_9(%arg0: i32) -> (i32, i32) {
    %c0_i32 = arith.constant 0 : i32
    %c0_i32_0 = arith.constant 0 : i32
    %c0_i32_1 = arith.constant 0 : i32
    return %c0_i32, %c0_i32_0 : i32, i32
  }
  func.func @transform_10(%arg0: i32) -> (i32, i32, i32) {
    %c0_i32 = arith.constant 0 : i32
    %c0_i32_0 = arith.constant 0 : i32
    %c0_i32_1 = arith.constant 0 : i32
    return %arg0, %c0_i32, %c0_i32_0 : i32, i32, i32
  }
}

module attributes {stable_mosaic.version = 11 : i64} {
  func.func @_attn_kernel(%arg0: i32, %arg1: memref<1x8x32xf32, #tpu.memory_space<vmem>>, %arg2: memref<32x96xf32, #tpu.memory_space<vmem>>, %arg3: memref<1x96xf32, #tpu.memory_space<vmem>>, %arg4: memref<1x8x8x32xf32, #tpu.memory_space<vmem>>, %arg5: memref<1x8x8x32xf32, #tpu.memory_space<vmem>>, %arg6: memref<4x8xf32, #tpu.memory_space<vmem>>, %arg7: memref<8x4xf32, #tpu.memory_space<vmem>>, %arg8: memref<8x32xf32, #tpu.memory_space<vmem>>) attributes {dimension_semantics = [#tpu.dimension_semantics<arbitrary>], iteration_bounds = array<i64: 1>, scalar_prefetch = 0 : i64, scratch_operands = 0 : i64, tpu.core_type = #tpu.core_type<tc>, window_params = [{transform_indices = @transform_0, window_bounds = array<i64: 1, 8, 32>}, {pipeline_mode = #tpu.pipeline_mode<synchronous>, transform_indices = @transform_1, window_bounds = array<i64: 32, 96>}, {pipeline_mode = #tpu.pipeline_mode<synchronous>, transform_indices = @transform_2, window_bounds = array<i64: 1, 96>}, {transform_indices = @transform_3, window_bounds = array<i64: 1, 8, 8, 32>}, {transform_indices = @transform_4, window_bounds = array<i64: 1, 8, 8, 32>}, {pipeline_mode = #tpu.pipeline_mode<synchronous>, transform_indices = @transform_5, window_bounds = array<i64: 4, 8>}, {pipeline_mode = #tpu.pipeline_mode<synchronous>, transform_indices = @transform_6, window_bounds = array<i64: 8, 4>}, {pipeline_mode = #tpu.pipeline_mode<synchronous>, transform_indices = @transform_7, window_bounds = array<i64: 8, 32>}]} {
    %c0 = arith.constant 0 : index
    %c0_0 = arith.constant 0 : index
    %c0_1 = arith.constant 0 : index
    %0 = vector.load %arg1[%c0, %c0_0, %c0_1] : memref<1x8x32xf32, #tpu.memory_space<vmem>>, vector<1x8x32xf32>
    %1 = vector.shape_cast %0 : vector<1x8x32xf32> to vector<8x32xf32>
    %c0_2 = arith.constant 0 : index
    %c0_3 = arith.constant 0 : index
    %2 = vector.load %arg2[%c0_2, %c0_3] : memref<32x96xf32, #tpu.memory_space<vmem>>, vector<32x96xf32>
    %cst = arith.constant dense<0.000000e+00> : vector<8x96xf32>
    %3 = tpu.matmul %1, %2, %cst {dimension_numbers = #tpu.dot_dimension_numbers<[1], [0], [0], [1], [0, 0, 1, 1], [], []>} : vector<8x32xf32>, vector<32x96xf32>, vector<8x96xf32> -> vector<8x96xf32>
    %c0_4 = arith.constant 0 : index
    %c0_5 = arith.constant 0 : index
    %4 = vector.load %arg3[%c0_4, %c0_5] : memref<1x96xf32, #tpu.memory_space<vmem>>, vector<1x96xf32>
    %5 = vector.broadcast %4 : vector<1x96xf32> to vector<8x96xf32>
    %6 = arith.addf %3, %5 : vector<8x96xf32>
    %c0_6 = arith.constant 0 : index
    %c0_7 = arith.constant 0 : index
    %c0_8 = arith.constant 0 : index
    %c0_9 = arith.constant 0 : index
    %7 = vector.load %arg4[%c0_6, %c0_7, %c0_8, %c0_9] : memref<1x8x8x32xf32, #tpu.memory_space<vmem>>, vector<1x8x8x32xf32>
    %8 = vector.shape_cast %7 : vector<1x8x8x32xf32> to vector<8x8x32xf32>
    %c0_10 = arith.constant 0 : index
    %c0_11 = arith.constant 0 : index
    %c0_12 = arith.constant 0 : index
    %c0_13 = arith.constant 0 : index
    %9 = vector.load %arg5[%c0_10, %c0_11, %c0_12, %c0_13] : memref<1x8x8x32xf32, #tpu.memory_space<vmem>>, vector<1x8x8x32xf32>
    %10 = vector.shape_cast %9 : vector<1x8x8x32xf32> to vector<8x8x32xf32>
    %11 = vector.extract_strided_slice %6 {offsets = [0, 0], sizes = [8, 32], strides = [1, 1]} : vector<8x96xf32> to vector<8x32xf32>
    %12 = vector.shape_cast %11 : vector<8x32xf32> to vector<8x1x32xf32>
    %13 = vector.broadcast %12 : vector<8x1x32xf32> to vector<8x8x32xf32>
    %14 = arith.mulf %8, %13 : vector<8x8x32xf32>
    %15 = vector.extract_strided_slice %6 {offsets = [0, 0], sizes = [8, 8], strides = [1, 1]} : vector<8x96xf32> to vector<8x8xf32>
    %16 = vector.extract_strided_slice %6 {offsets = [0, 32], sizes = [8, 8], strides = [1, 1]} : vector<8x96xf32> to vector<8x8xf32>
    %17 = vector.extract_strided_slice %6 {offsets = [0, 64], sizes = [8, 8], strides = [1, 1]} : vector<8x96xf32> to vector<8x8xf32>
    %18 = tpu.transpose %16, [1, 0] : vector<8x8xf32> -> vector<8x8xf32>
    %cst_14 = arith.constant dense<0.000000e+00> : vector<8x8xf32>
    %19 = tpu.matmul %15, %18, %cst_14 {dimension_numbers = #tpu.dot_dimension_numbers<[1], [0], [0], [1], [0, 0, 1, 1], [], []>} : vector<8x8xf32>, vector<8x8xf32>, vector<8x8xf32> -> vector<8x8xf32>
    %20 = vector.extract_strided_slice %14 {offsets = [0, 0, 0], sizes = [8, 8, 8], strides = [1, 1, 1]} : vector<8x8x32xf32> to vector<8x8x8xf32>
    %cst_15 = arith.constant dense<0.000000e+00> : vector<8x8xf32>
    %21 = vector.multi_reduction <add>, %20, %cst_15 [2] : vector<8x8x8xf32> to vector<8x8xf32>
    %22 = arith.addf %19, %21 : vector<8x8xf32>
    %cst_16 = arith.constant 0.353553385 : f32
    %23 = vector.broadcast %cst_16 : f32 to vector<8x8xf32>
    %24 = arith.mulf %22, %23 : vector<8x8xf32>
    %c0_17 = arith.constant 0 : index
    %c0_18 = arith.constant 0 : index
    %25 = vector.load %arg6[%c0_17, %c0_18] : memref<4x8xf32, #tpu.memory_space<vmem>>, vector<1x8xf32>
    %c0_19 = arith.constant 0 : index
    %c0_20 = arith.constant 0 : index
    %26 = vector.load %arg7[%c0_19, %c0_20] : memref<8x4xf32, #tpu.memory_space<vmem>>, vector<8x1xf32>
    %27 = vector.broadcast %26 : vector<8x1xf32> to vector<8x8xf32>
    %28 = vector.broadcast %25 : vector<1x8xf32> to vector<8x8xf32>
    %29 = arith.mulf %27, %28 : vector<8x8xf32>
    %cst_21 = arith.constant 5.000000e-01 : f32
    %30 = vector.broadcast %cst_21 : f32 to vector<8x8xf32>
    %31 = arith.cmpf ogt, %29, %30 : vector<8x8xf32>
    %cst_22 = arith.constant -4.2949673E+9 : f32
    %32 = vector.broadcast %cst_22 : f32 to vector<8x8xf32>
    %33 = arith.select %31, %32, %24 : vector<8x8xi1>, vector<8x8xf32>
    %cst_23 = arith.constant dense<0xFF800000> : vector<8xf32>
    %34 = vector.multi_reduction <maximumf>, %33, %cst_23 [1] : vector<8x8xf32> to vector<8xf32>
    %35 = vector.shape_cast %34 : vector<8xf32> to vector<8x1xf32>
    %36 = vector.broadcast %35 : vector<8x1xf32> to vector<8x8xf32>
    %37 = arith.subf %33, %36 : vector<8x8xf32>
    %38 = math.exp %37 : vector<8x8xf32>
    %cst_24 = arith.constant dense<0.000000e+00> : vector<8xf32>
    %39 = vector.multi_reduction <add>, %38, %cst_24 [1] : vector<8x8xf32> to vector<8xf32>
    %40 = vector.shape_cast %39 : vector<8xf32> to vector<8x1xf32>
    %41 = tpu.reciprocal %40 {approx = true} : vector<8x1xf32> -> vector<8x1xf32>
    %42 = vector.broadcast %41 : vector<8x1xf32> to vector<8x8xf32>
    %43 = arith.mulf %38, %42 : vector<8x8xf32>
    %cst_25 = arith.constant dense<0.000000e+00> : vector<8x8xf32>
    %44 = tpu.matmul %43, %17, %cst_25 {dimension_numbers = #tpu.dot_dimension_numbers<[1], [0], [0], [1], [0, 0, 1, 1], [], []>} : vector<8x8xf32>, vector<8x8xf32>, vector<8x8xf32> -> vector<8x8xf32>
    %45 = vector.extract_strided_slice %10 {offsets = [0, 0, 0], sizes = [8, 8, 8], strides = [1, 1, 1]} : vector<8x8x32xf32> to vector<8x8x8xf32>
    %46 = vector.shape_cast %43 : vector<8x8xf32> to vector<8x8x1xf32>
    %47 = vector.broadcast %46 : vector<8x8x1xf32> to vector<8x8x8xf32>
    %48 = arith.mulf %47, %45 : vector<8x8x8xf32>
    %cst_26 = arith.constant dense<0.000000e+00> : vector<8x8xf32>
    %49 = vector.multi_reduction <add>, %48, %cst_26 [1] : vector<8x8x8xf32> to vector<8x8xf32>
    %50 = arith.addf %44, %49 : vector<8x8xf32>
    %c0_27 = arith.constant 0 : index
    %c0_28 = arith.constant 0 : index
    %51 = vector.load %arg8[%c0_27, %c0_28] : memref<8x32xf32, #tpu.memory_space<vmem>>, vector<8x8xf32>
    tpu.vector_store %arg8[%c0_27, %c0_28], %50 {strides = array<i32>} : memref<8x32xf32, #tpu.memory_space<vmem>>, vector<8x8xf32>,
    %52 = vector.extract_strided_slice %6 {offsets = [0, 8], sizes = [8, 8], strides = [1, 1]} : vector<8x96xf32> to vector<8x8xf32>
    %53 = vector.extract_strided_slice %6 {offsets = [0, 40], sizes = [8, 8], strides = [1, 1]} : vector<8x96xf32> to vector<8x8xf32>
    %54 = vector.extract_strided_slice %6 {offsets = [0, 72], sizes = [8, 8], strides = [1, 1]} : vector<8x96xf32> to vector<8x8xf32>
    %55 = tpu.transpose %53, [1, 0] : vector<8x8xf32> -> vector<8x8xf32>
    %cst_29 = arith.constant dense<0.000000e+00> : vector<8x8xf32>
    %56 = tpu.matmul %52, %55, %cst_29 {dimension_numbers = #tpu.dot_dimension_numbers<[1], [0], [0], [1], [0, 0, 1, 1], [], []>} : vector<8x8xf32>, vector<8x8xf32>, vector<8x8xf32> -> vector<8x8xf32>
    %57 = vector.extract_strided_slice %14 {offsets = [0, 0, 8], sizes = [8, 8, 8], strides = [1, 1, 1]} : vector<8x8x32xf32> to vector<8x8x8xf32>
    %cst_30 = arith.constant dense<0.000000e+00> : vector<8x8xf32>
    %58 = vector.multi_reduction <add>, %57, %cst_30 [2] : vector<8x8x8xf32> to vector<8x8xf32>
    %59 = arith.addf %56, %58 : vector<8x8xf32>
    %cst_31 = arith.constant 0.353553385 : f32
    %60 = vector.broadcast %cst_31 : f32 to vector<8x8xf32>
    %61 = arith.mulf %59, %60 : vector<8x8xf32>
    %c1 = arith.constant 1 : index
    %c0_32 = arith.constant 0 : index
    %62 = vector.load %arg6[%c1, %c0_32] : memref<4x8xf32, #tpu.memory_space<vmem>>, vector<1x8xf32>
    %c0_33 = arith.constant 0 : index
    %c1_34 = arith.constant 1 : index
    %63 = vector.load %arg7[%c0_33, %c1_34] : memref<8x4xf32, #tpu.memory_space<vmem>>, vector<8x1xf32>
    %64 = vector.broadcast %63 : vector<8x1xf32> to vector<8x8xf32>
    %65 = vector.broadcast %62 : vector<1x8xf32> to vector<8x8xf32>
    %66 = arith.mulf %64, %65 : vector<8x8xf32>
    %cst_35 = arith.constant 5.000000e-01 : f32
    %67 = vector.broadcast %cst_35 : f32 to vector<8x8xf32>
    %68 = arith.cmpf ogt, %66, %67 : vector<8x8xf32>
    %cst_36 = arith.constant -4.2949673E+9 : f32
    %69 = vector.broadcast %cst_36 : f32 to vector<8x8xf32>
    %70 = arith.select %68, %69, %61 : vector<8x8xi1>, vector<8x8xf32>
    %cst_37 = arith.constant dense<0xFF800000> : vector<8xf32>
    %71 = vector.multi_reduction <maximumf>, %70, %cst_37 [1] : vector<8x8xf32> to vector<8xf32>
    %72 = vector.shape_cast %71 : vector<8xf32> to vector<8x1xf32>
    %73 = vector.broadcast %72 : vector<8x1xf32> to vector<8x8xf32>
    %74 = arith.subf %70, %73 : vector<8x8xf32>
    %75 = math.exp %74 : vector<8x8xf32>
    %cst_38 = arith.constant dense<0.000000e+00> : vector<8xf32>
    %76 = vector.multi_reduction <add>, %75, %cst_38 [1] : vector<8x8xf32> to vector<8xf32>
    %77 = vector.shape_cast %76 : vector<8xf32> to vector<8x1xf32>
    %78 = tpu.reciprocal %77 {approx = true} : vector<8x1xf32> -> vector<8x1xf32>
    %79 = vector.broadcast %78 : vector<8x1xf32> to vector<8x8xf32>
    %80 = arith.mulf %75, %79 : vector<8x8xf32>
    %cst_39 = arith.constant dense<0.000000e+00> : vector<8x8xf32>
    %81 = tpu.matmul %80, %54, %cst_39 {dimension_numbers = #tpu.dot_dimension_numbers<[1], [0], [0], [1], [0, 0, 1, 1], [], []>} : vector<8x8xf32>, vector<8x8xf32>, vector<8x8xf32> -> vector<8x8xf32>
    %82 = vector.extract_strided_slice %10 {offsets = [0, 0, 8], sizes = [8, 8, 8], strides = [1, 1, 1]} : vector<8x8x32xf32> to vector<8x8x8xf32>
    %83 = vector.shape_cast %80 : vector<8x8xf32> to vector<8x8x1xf32>
    %84 = vector.broadcast %83 : vector<8x8x1xf32> to vector<8x8x8xf32>
    %85 = arith.mulf %84, %82 : vector<8x8x8xf32>
    %cst_40 = arith.constant dense<0.000000e+00> : vector<8x8xf32>
    %86 = vector.multi_reduction <add>, %85, %cst_40 [1] : vector<8x8x8xf32> to vector<8x8xf32>
    %87 = arith.addf %81, %86 : vector<8x8xf32>
    %c0_41 = arith.constant 0 : index
    %c8 = arith.constant 8 : index
    %88 = vector.load %arg8[%c0_41, %c8] : memref<8x32xf32, #tpu.memory_space<vmem>>, vector<8x8xf32>
    tpu.vector_store %arg8[%c0_41, %c8], %87 {strides = array<i32>} : memref<8x32xf32, #tpu.memory_space<vmem>>, vector<8x8xf32>,
    %89 = vector.extract_strided_slice %6 {offsets = [0, 16], sizes = [8, 8], strides = [1, 1]} : vector<8x96xf32> to vector<8x8xf32>
    %90 = vector.extract_strided_slice %6 {offsets = [0, 48], sizes = [8, 8], strides = [1, 1]} : vector<8x96xf32> to vector<8x8xf32>
    %91 = vector.extract_strided_slice %6 {offsets = [0, 80], sizes = [8, 8], strides = [1, 1]} : vector<8x96xf32> to vector<8x8xf32>
    %92 = tpu.transpose %90, [1, 0] : vector<8x8xf32> -> vector<8x8xf32>
    %cst_42 = arith.constant dense<0.000000e+00> : vector<8x8xf32>
    %93 = tpu.matmul %89, %92, %cst_42 {dimension_numbers = #tpu.dot_dimension_numbers<[1], [0], [0], [1], [0, 0, 1, 1], [], []>} : vector<8x8xf32>, vector<8x8xf32>, vector<8x8xf32> -> vector<8x8xf32>
    %94 = vector.extract_strided_slice %14 {offsets = [0, 0, 16], sizes = [8, 8, 8], strides = [1, 1, 1]} : vector<8x8x32xf32> to vector<8x8x8xf32>
    %cst_43 = arith.constant dense<0.000000e+00> : vector<8x8xf32>
    %95 = vector.multi_reduction <add>, %94, %cst_43 [2] : vector<8x8x8xf32> to vector<8x8xf32>
    %96 = arith.addf %93, %95 : vector<8x8xf32>
    %cst_44 = arith.constant 0.353553385 : f32
    %97 = vector.broadcast %cst_44 : f32 to vector<8x8xf32>
    %98 = arith.mulf %96, %97 : vector<8x8xf32>
    %c2 = arith.constant 2 : index
    %c0_45 = arith.constant 0 : index
    %99 = vector.load %arg6[%c2, %c0_45] : memref<4x8xf32, #tpu.memory_space<vmem>>, vector<1x8xf32>
    %c0_46 = arith.constant 0 : index
    %c2_47 = arith.constant 2 : index
    %100 = vector.load %arg7[%c0_46, %c2_47] : memref<8x4xf32, #tpu.memory_space<vmem>>, vector<8x1xf32>
    %101 = vector.broadcast %100 : vector<8x1xf32> to vector<8x8xf32>
    %102 = vector.broadcast %99 : vector<1x8xf32> to vector<8x8xf32>
    %103 = arith.mulf %101, %102 : vector<8x8xf32>
    %cst_48 = arith.constant 5.000000e-01 : f32
    %104 = vector.broadcast %cst_48 : f32 to vector<8x8xf32>
    %105 = arith.cmpf ogt, %103, %104 : vector<8x8xf32>
    %cst_49 = arith.constant -4.2949673E+9 : f32
    %106 = vector.broadcast %cst_49 : f32 to vector<8x8xf32>
    %107 = arith.select %105, %106, %98 : vector<8x8xi1>, vector<8x8xf32>
    %cst_50 = arith.constant dense<0xFF800000> : vector<8xf32>
    %108 = vector.multi_reduction <maximumf>, %107, %cst_50 [1] : vector<8x8xf32> to vector<8xf32>
    %109 = vector.shape_cast %108 : vector<8xf32> to vector<8x1xf32>
    %110 = vector.broadcast %109 : vector<8x1xf32> to vector<8x8xf32>
    %111 = arith.subf %107, %110 : vector<8x8xf32>
    %112 = math.exp %111 : vector<8x8xf32>
    %cst_51 = arith.constant dense<0.000000e+00> : vector<8xf32>
    %113 = vector.multi_reduction <add>, %112, %cst_51 [1] : vector<8x8xf32> to vector<8xf32>
    %114 = vector.shape_cast %113 : vector<8xf32> to vector<8x1xf32>
    %115 = tpu.reciprocal %114 {approx = true} : vector<8x1xf32> -> vector<8x1xf32>
    %116 = vector.broadcast %115 : vector<8x1xf32> to vector<8x8xf32>
    %117 = arith.mulf %112, %116 : vector<8x8xf32>
    %cst_52 = arith.constant dense<0.000000e+00> : vector<8x8xf32>
    %118 = tpu.matmul %117, %91, %cst_52 {dimension_numbers = #tpu.dot_dimension_numbers<[1], [0], [0], [1], [0, 0, 1, 1], [], []>} : vector<8x8xf32>, vector<8x8xf32>, vector<8x8xf32> -> vector<8x8xf32>
    %119 = vector.extract_strided_slice %10 {offsets = [0, 0, 16], sizes = [8, 8, 8], strides = [1, 1, 1]} : vector<8x8x32xf32> to vector<8x8x8xf32>
    %120 = vector.shape_cast %117 : vector<8x8xf32> to vector<8x8x1xf32>
    %121 = vector.broadcast %120 : vector<8x8x1xf32> to vector<8x8x8xf32>
    %122 = arith.mulf %121, %119 : vector<8x8x8xf32>
    %cst_53 = arith.constant dense<0.000000e+00> : vector<8x8xf32>
    %123 = vector.multi_reduction <add>, %122, %cst_53 [1] : vector<8x8x8xf32> to vector<8x8xf32>
    %124 = arith.addf %118, %123 : vector<8x8xf32>
    %c0_54 = arith.constant 0 : index
    %c16 = arith.constant 16 : index
    %125 = vector.load %arg8[%c0_54, %c16] : memref<8x32xf32, #tpu.memory_space<vmem>>, vector<8x8xf32>
    tpu.vector_store %arg8[%c0_54, %c16], %124 {strides = array<i32>} : memref<8x32xf32, #tpu.memory_space<vmem>>, vector<8x8xf32>,
    %126 = vector.extract_strided_slice %6 {offsets = [0, 24], sizes = [8, 8], strides = [1, 1]} : vector<8x96xf32> to vector<8x8xf32>
    %127 = vector.extract_strided_slice %6 {offsets = [0, 56], sizes = [8, 8], strides = [1, 1]} : vector<8x96xf32> to vector<8x8xf32>
    %128 = vector.extract_strided_slice %6 {offsets = [0, 88], sizes = [8, 8], strides = [1, 1]} : vector<8x96xf32> to vector<8x8xf32>
    %129 = tpu.transpose %127, [1, 0] : vector<8x8xf32> -> vector<8x8xf32>
    %cst_55 = arith.constant dense<0.000000e+00> : vector<8x8xf32>
    %130 = tpu.matmul %126, %129, %cst_55 {dimension_numbers = #tpu.dot_dimension_numbers<[1], [0], [0], [1], [0, 0, 1, 1], [], []>} : vector<8x8xf32>, vector<8x8xf32>, vector<8x8xf32> -> vector<8x8xf32>
    %131 = vector.extract_strided_slice %14 {offsets = [0, 0, 24], sizes = [8, 8, 8], strides = [1, 1, 1]} : vector<8x8x32xf32> to vector<8x8x8xf32>
    %cst_56 = arith.constant dense<0.000000e+00> : vector<8x8xf32>
    %132 = vector.multi_reduction <add>, %131, %cst_56 [2] : vector<8x8x8xf32> to vector<8x8xf32>
    %133 = arith.addf %130, %132 : vector<8x8xf32>
    %cst_57 = arith.constant 0.353553385 : f32
    %134 = vector.broadcast %cst_57 : f32 to vector<8x8xf32>
    %135 = arith.mulf %133, %134 : vector<8x8xf32>
    %c3 = arith.constant 3 : index
    %c0_58 = arith.constant 0 : index
    %136 = vector.load %arg6[%c3, %c0_58] : memref<4x8xf32, #tpu.memory_space<vmem>>, vector<1x8xf32>
    %c0_59 = arith.constant 0 : index
    %c3_60 = arith.constant 3 : index
    %137 = vector.load %arg7[%c0_59, %c3_60] : memref<8x4xf32, #tpu.memory_space<vmem>>, vector<8x1xf32>
    %138 = vector.broadcast %137 : vector<8x1xf32> to vector<8x8xf32>
    %139 = vector.broadcast %136 : vector<1x8xf32> to vector<8x8xf32>
    %140 = arith.mulf %138, %139 : vector<8x8xf32>
    %cst_61 = arith.constant 5.000000e-01 : f32
    %141 = vector.broadcast %cst_61 : f32 to vector<8x8xf32>
    %142 = arith.cmpf ogt, %140, %141 : vector<8x8xf32>
    %cst_62 = arith.constant -4.2949673E+9 : f32
    %143 = vector.broadcast %cst_62 : f32 to vector<8x8xf32>
    %144 = arith.select %142, %143, %135 : vector<8x8xi1>, vector<8x8xf32>
    %cst_63 = arith.constant dense<0xFF800000> : vector<8xf32>
    %145 = vector.multi_reduction <maximumf>, %144, %cst_63 [1] : vector<8x8xf32> to vector<8xf32>
    %146 = vector.shape_cast %145 : vector<8xf32> to vector<8x1xf32>
    %147 = vector.broadcast %146 : vector<8x1xf32> to vector<8x8xf32>
    %148 = arith.subf %144, %147 : vector<8x8xf32>
    %149 = math.exp %148 : vector<8x8xf32>
    %cst_64 = arith.constant dense<0.000000e+00> : vector<8xf32>
    %150 = vector.multi_reduction <add>, %149, %cst_64 [1] : vector<8x8xf32> to vector<8xf32>
    %151 = vector.shape_cast %150 : vector<8xf32> to vector<8x1xf32>
    %152 = tpu.reciprocal %151 {approx = true} : vector<8x1xf32> -> vector<8x1xf32>
    %153 = vector.broadcast %152 : vector<8x1xf32> to vector<8x8xf32>
    %154 = arith.mulf %149, %153 : vector<8x8xf32>
    %cst_65 = arith.constant dense<0.000000e+00> : vector<8x8xf32>
    %155 = tpu.matmul %154, %128, %cst_65 {dimension_numbers = #tpu.dot_dimension_numbers<[1], [0], [0], [1], [0, 0, 1, 1], [], []>} : vector<8x8xf32>, vector<8x8xf32>, vector<8x8xf32> -> vector<8x8xf32>
    %156 = vector.extract_strided_slice %10 {offsets = [0, 0, 24], sizes = [8, 8, 8], strides = [1, 1, 1]} : vector<8x8x32xf32> to vector<8x8x8xf32>
    %157 = vector.shape_cast %154 : vector<8x8xf32> to vector<8x8x1xf32>
    %158 = vector.broadcast %157 : vector<8x8x1xf32> to vector<8x8x8xf32>
    %159 = arith.mulf %158, %156 : vector<8x8x8xf32>
    %cst_66 = arith.constant dense<0.000000e+00> : vector<8x8xf32>
    %160 = vector.multi_reduction <add>, %159, %cst_66 [1] : vector<8x8x8xf32> to vector<8x8xf32>
    %161 = arith.addf %155, %160 : vector<8x8xf32>
    %c0_67 = arith.constant 0 : index
    %c24 = arith.constant 24 : index
    %162 = vector.load %arg8[%c0_67, %c24] : memref<8x32xf32, #tpu.memory_space<vmem>>, vector<8x8xf32>
    tpu.vector_store %arg8[%c0_67, %c24], %161 {strides = array<i32>} : memref<8x32xf32, #tpu.memory_space<vmem>>, vector<8x8xf32>,
    return
  }
  func.func @transform_0(%arg0: i32) -> (i32, i32, i32) {
    %c0_i32 = arith.constant 0 : i32
    %c0_i32_0 = arith.constant 0 : i32
    %c0_i32_1 = arith.constant 0 : i32
    %c0_i32_2 = arith.constant 0 : i32
    return %c0_i32, %c0_i32_0, %c0_i32_1 : i32, i32, i32
  }
  func.func @transform_1(%arg0: i32) -> (i32, i32) {
    %c0_i32 = arith.constant 0 : i32
    %c0_i32_0 = arith.constant 0 : i32
    %c0_i32_1 = arith.constant 0 : i32
    return %c0_i32, %c0_i32_0 : i32, i32
  }
  func.func @transform_2(%arg0: i32) -> (i32, i32) {
    %c0_i32 = arith.constant 0 : i32
    %c0_i32_0 = arith.constant 0 : i32
    %c0_i32_1 = arith.constant 0 : i32
    return %c0_i32, %c0_i32_0 : i32, i32
  }
  func.func @transform_3(%arg0: i32) -> (i32, i32, i32, i32) {
    %c0_i32 = arith.constant 0 : i32
    %c0_i32_0 = arith.constant 0 : i32
    %c0_i32_1 = arith.constant 0 : i32
    %c0_i32_2 = arith.constant 0 : i32
    %c0_i32_3 = arith.constant 0 : i32
    return %c0_i32, %c0_i32_0, %c0_i32_1, %c0_i32_2 : i32, i32, i32, i32
  }
  func.func @transform_4(%arg0: i32) -> (i32, i32, i32, i32) {
    %c0_i32 = arith.constant 0 : i32
    %c0_i32_0 = arith.constant 0 : i32
    %c0_i32_1 = arith.constant 0 : i32
    %c0_i32_2 = arith.constant 0 : i32
    %c0_i32_3 = arith.constant 0 : i32
    return %c0_i32, %c0_i32_0, %c0_i32_1, %c0_i32_2 : i32, i32, i32, i32
  }
  func.func @transform_5(%arg0: i32) -> (i32, i32) {
    %c0_i32 = arith.constant 0 : i32
    %c0_i32_0 = arith.constant 0 : i32
    %c0_i32_1 = arith.constant 0 : i32
    return %c0_i32, %c0_i32_0 : i32, i32
  }
  func.func @transform_6(%arg0: i32) -> (i32, i32) {
    %c0_i32 = arith.constant 0 : i32
    %c0_i32_0 = arith.constant 0 : i32
    %c0_i32_1 = arith.constant 0 : i32
    return %c0_i32, %c0_i32_0 : i32, i32
  }
  func.func @transform_7(%arg0: i32) -> (i32, i32) {
    %c0_i32 = arith.constant 0 : i32
    %c0_i32_0 = arith.constant 0 : i32
    %c0_i32_1 = arith.constant 0 : i32
    return %c0_i32, %c0_i32_0 : i32, i32
  }
}

</mosaic_0001>

<bundles_post_ra>
// kernel: time_aware_encoder_layer.3
= control target key start
LH: loop header
LB: loop body
LE: loop exit
PB: predicated region body
PF: predicated region fallthrough
CT: control target
= control target key end

     0   :  { %s1079_s0 = inlined_call_operand.vmem [shape: f32[2,8,32], index: 0, kind: input, shape index: {}]   ;;  %s1080_s1 = inlined_call_operand.vmem [shape: f32[8,32], index: 1, kind: input, shape index: {}]   ;;  %s1081_s2 = inlined_call_operand.vmem [shape: f32[32,64], index: 2, kind: input, shape index: {}]   ;;  %s1082_s3 = inlined_call_operand.vmem [shape: f32[1,64], index: 3, kind: input, shape index: {}]   ;;  %s1083_s4 = inlined_call_operand.vmem [shape: f32[64,32], index: 4, kind: input, shape index: {}]   ;;  %s1084_s5 = inlined_call_operand.vmem [shape: f32[1,32], index: 5, kind: input, shape index: {}]   ;;  %s1085_s6 = inlined_call_operand.vmem [shape: f32[1,32], index: 6, kind: input, shape index: {}]   ;;  %s1086_s7 = inlined_call_operand.vmem [shape: f32[1,32], index: 7, kind: input, shape index: {}]   ;;  %s1087_s8 = inlined_call_operand.vmem [shape: f32[1,32], index: 8, kind: input, shape index: {}]   ;;  %s1088_s9 = inlined_call_operand.vmem [shape: f32[1,32], index: 9, kind: input, shape index: {}]   ;;  %s1089_s10 = inlined_call_operand.hbm [shape: f32[2,8,32], index: 10, kind: output, shape index: {}]  }
   0x1   :  { %1090 = sst [smem:[#allocation5_spill]] %s1079_s0 }
   0x2   :  { %15 = vsyncpa [#allocation3], 0 }
   0x3   :  { %17 = vsyncpa [#allocation3 + $0x1], 0  ;;  %s916_s13 = smov 0   ;;  %s918_s14 = smov 0  }
   0x4   :  { %s920_s15 = smov 0   ;;  %s922_s16 = smov 0  }
   0x5 LB: > { %s937_s17 = sadd.s32 4294967295, %s855_s16   ;;  %s667_s18 = sadd.s32 4294967294, %s855_s16   ;;  %s855_s16 = sphi %s922_s16, %s1097_s16   ;;  %s851_s15 = sphi %s920_s15, %s1096_s15   ;;  %s847_s14 = sphi %s918_s14, %s1095_s14   ;;  %s843_s13 = sphi %s916_s13, %s1094_s13  }
   0x6   : > { %s941_s19 = sadd.s32 1, %s855_s16   ;;  %s245_s20 = sadd.s32 1, %s851_s15 }
   0x7   : > { %s242_s21 = ssub.s32 %s855_s16, %s941_s19  ;;  %p255_p0 = scmp.ne.s32.totalorder %s851_s15, %s847_s14 }
   0x8   : > { %p243_p1 = scmp.eq.s32.totalorder %s242_s21, 0  ;;  %p256_p2 = scmp.eq.s32.totalorder %s937_s17, 1 }
   0x9   : > { %p261_p3 = scmp.ne.s32.totalorder %s847_s14, %s843_s13  ;;  %p262_p4 = scmp.eq.s32.totalorder %s667_s18, 1 }
   0xa   : > { %s952_s22 = scalar_select %p243_p1, %s851_s15, %s245_s20  }
   0xb   : > { %p954_p5 = por %p256_p2, %p255_p0  ;;  %p958_p6 = por %p262_p4, %p261_p3 }
   0xc   : > { %p670_p7 = scmp.ge.s32.totalorder %s855_s16, 1  ;;  %p314_p8 = scmp.lt.s32.totalorder %s855_s16, 3 }
   0xe   : > { %p315_p9 = pnand %p670_p7, %p314_p8 }
   0xf   : > { %p351_p10 = scmp.lt.s32.totalorder (!%p315_p9), %s937_s17, 1  ;;  %v356_v0 = vld [vmem:[%s1080_s1] sm:$0xff] (!%p315_p9)  ;;  %s1093_s0 = sld [smem:[#allocation5_spill]] (!%p315_p9)  ;;  %vm358_vm0 = vcmask (!%p315_p9), 261120   ;;  %v390_v10 = vld [vmem:[%s1081_s2 + $0x8] sm:$0xff] (!%p315_p9)  ;;  %v391_v11 = vld [vmem:[%s1081_s2 + $0x10] sm:$0xff] (!%p315_p9) }
  0x10   : > { %318 = sbr.rel (%p315_p9) target bundleno = 1102 (0x44e), region = 60  ;;  %v389_v9 = vld [vmem:[%s1081_s2] sm:$0xff] (!%p315_p9)  ;;  %v857_v12 = vmov (!%p315_p9), 0.0|0.0   ;;  %v392_v14 = vld [vmem:[%s1081_s2 + $0x18] sm:$0xff] (!%p315_p9)  ;;  %vm858_vm1 = vmmov (!%p315_p9), 0   ;;  %v859_v15 = vmov (!%p315_p9), 0.0  }
  0x11   : > { %729 = vmatprep.subr.bf16.mxu0 (!%p315_p9), %v857_v12  ;;  %v730_v13 = vpack.c.bf16 (!%p315_p9), %v390_v10, %v389_v9  ;;  %707 = vmatprep.mubr.msk.f32.mxu0 (!%p315_p9), %vm858_vm1, %v859_v15  ;;  %v733_v16 = vpack.c.bf16 (!%p315_p9), %v392_v14, %v391_v11  ;;  %v474_v17 = vld [vmem:[%s1083_s4] sm:$0xff] (!%p315_p9)  ;;  %v475_v18 = vld [vmem:[%s1083_s4 + $0x8] sm:$0xff] (!%p315_p9)  ;;  %v476_v19 = vld [vmem:[%s1083_s4 + $0x10] sm:$0xff] (!%p315_p9)  ;;  %vm489_vm2 = vcmask (!%p315_p9), 523264  }
  0x12   : > { %735 = vmatprep.subr.bf16.mxu1 (!%p315_p9), %v857_v12  ;;  %726 = vmatprep.mubr.msk.f32.mxu1 (!%p315_p9), %vm858_vm1, %v859_v15  ;;  %v736_v20 = vpack.c.bf16 (!%p315_p9), %v475_v18, %v474_v17  ;;  %v477_v21 = vld [vmem:[%s1083_s4 + $0x18] sm:$0xff] (!%p315_p9)  ;;  %v478_v23 = vld [vmem:[%s1083_s4 + $0x20] sm:$0xff] (!%p315_p9)  ;;  %v479_v24 = vld [vmem:[%s1083_s4 + $0x28] sm:$0xff] (!%p315_p9) }
  0x13   : > { %731 = vmatpush3.bf16.msra.mxu0 (!%p315_p9), %v730_v13  ;;  %v739_v22 = vpack.c.bf16 (!%p315_p9), %v477_v21, %v476_v19  ;;  %v742_v25 = vpack.c.bf16 (!%p315_p9), %v479_v24, %v478_v23  ;;  %v673_v30 = vld [vmem:[%s1085_s6] ss:$0 sm:$0xff] (!%p315_p9)  ;;  %v480_v35 = vld [vmem:[%s1083_s4 + $0x30] sm:$0xff] (!%p315_p9)  ;;  %v481_v36 = vld [vmem:[%s1083_s4 + $0x38] sm:$0xff] (!%p315_p9) }
  0x14   : > { %732 = vmatprep.subr.bf16.mxu0 (!%p315_p9), %v857_v12  ;;  %737 = vmatpush3.bf16.msra.mxu1 (!%p315_p9), %v736_v20  ;;  %v674_v32 = vld [vmem:[%s1086_s7] ss:$0 sm:$0xff] (!%p315_p9)  ;;  %v745_v37 = vpack.c.bf16 (!%p315_p9), %v481_v36, %v480_v35 }
  0x15   : > { %738 = vmatprep.subr.bf16.mxu1 (!%p315_p9), %v857_v12  ;;  %v675_v38 = vld [vmem:[%s1082_s3] ss:$0 sm:$0xff] (!%p315_p9) }
  0x16   : > { %v677_v43 = vld [vmem:[%s1084_s5] ss:$0 sm:$0xff] (!%p315_p9) }
  0x17   : > { %s352_s25 = scalar_select %p351_p10, %s937_s17, 1  ;;  %734 = vmatpush3.bf16.msra.mxu0 %v733_v16  ;;  %v679_v58 = vld [vmem:[%s1087_s8] ss:$0 sm:$0xff] }
  0x18   : > { %740 = vmatpush3.bf16.msra.mxu1 %v739_v22  ;;  %v680_v60 = vld [vmem:[%s1088_s9] ss:$0 sm:$0xff] }
  0x19   : > { %s672_s26 = sshll.u32 %s352_s25, 3  ;;  %741 = vmatprep.subr.bf16.mxu1 %v857_v12 }
  0x1a   : > { %s354_s11 = scalar_lea.vmem %s1093_s0, %s672_s26  ;;  %s682_s26 = sshll.u32 %s937_s17, 7 }
  0x1b   : > { %v355_v1 = vld [vmem:[%s354_s11] sm:$0xff]  ;;  %s348_s11 = sand.u32 1, %s847_s14   ;;  %s1036_s0 = scalar_lea.hbm %s1089_s10, %s682_s26 }
  0x1c   : > { %v357_v2 = vadd.f32 %v356_v0, %v355_v1  ;;  %743 = vmatpush3.bf16.msra.mxu1 %v742_v25  ;;  %s671_s12 = sshll.u32 %s348_s11, 3  ;;  %s595_s18 = scalar_lea.sflag [#allocation3], %s348_s11 }
  0x1d   : > { %744 = vmatprep.subr.bf16.mxu1 %v857_v12  ;;  %s350_s27 = scalar_lea.vmem [#allocation2], %s671_s12  ;;  %s860_s17 = smov [#allocation2]  }
  0x1e   : > { %v359_v3 = vsel %vm358_vm0, %v357_v2, 0.0  ;;  %s608_s28 = sshll.u32 %s350_s27, 4  ;;  %s797_s12 = sshll.u32 %s860_s17, 4  ;;  %s1038_s28 = int_to_ptr.vmem [resolvable:$true] %s608_s28  ;;  %s798_s12 = int_to_ptr.vmem [resolvable:$false] %s797_s12 }
  0x1f   : > { %360 = vadd.xlane.f32.xlu0 %v359_v3  ;;  %s793_s20 = scalar_lea.vmem %s1038_s28, 128  ;;  %s799_s21 = scalar_lea.vmem %s798_s12, 256 }
  0x20   : > { %746 = vmatpush3.bf16.msra.mxu1 %v745_v37  ;;  %p794_p11 = scmp.ne.s32.totalorder %s1038_s28, %s793_s20  ;;  %p800_p0 = scmp.lt.s32.totalorder %s1038_s28, %s798_s12 }
  0x21   : > { %p801_p1 = scmp.lt.s32.totalorder %s799_s21, %s793_s20 }
  0x22   : > { %p795_p12 = pnand %p794_p11, %p954_p5 }
  0x23   : > { %p802_p2 = por %p801_p1, %p800_p0 }
  0x24   : > { %p796_p13 = pneg %p795_p12 }
  0x26   : > { %p803_p3 = pnand %p802_p2, %p796_p13 }
  0xac   : > { %v361_v4 = vpop.xlane.xlu0 %360 }
  0xad   : > { %v363_v5 = vmul.f32 0.03125, %v361_v4 }
  0xaf   : > { %v364_v6 = vsub.f32 %v357_v2, %v363_v5 }
  0xb1   : > { %v365_v7 = vmul.f32 %v364_v6, %v364_v6 }
  0xb3   : > { %v366_v8 = vsel %vm358_vm0, %v365_v7, 0.0 }
  0xb4   : > { %367 = vadd.xlane.f32.xlu0 %v366_v8 }
 0x141   : > { %v368_v26 = vpop.xlane.xlu0 %367 }
 0x142   : > { %v369_v27 = vmul.f32 0.03125, %v368_v26 }
 0x144   : > { %v370_v28 = vadd.f32 1e-05, %v369_v27 }
 0x146   : > { %789 = vrsqrt.f32 %v370_v28 }
 0x150   : > { %v790_v29 = vpop.eup %789 }
 0x151   : > { %v372_v31 = vmul.f32 %v790_v29, %v364_v6 }
 0x153   : > { %v380_v33 = vmul.f32 %v673_v30, %v372_v31 }
 0x155   : > { %v388_v34 = vadd.f32 %v674_v32, %v380_v33 }
 0x157   : > { %708 = vmatmul.mubr.msk.f32.vlgmr.msra.gmra.mrb[0].mxu0 %vm358_vm0, %v388_v34 }
 0x22a   : > { %v469_v39 = vpop.f32.mrb[0].mxu0 }
 0x22b   : > { %v470_v40 = vadd.f32 %v675_v38, %v469_v39  ;;  %v709_v41 = vpop.f32.mrb[1].mxu0 }
 0x22d   : > { %v473_v42 = vmax.f32 %v470_v40, 0.0 }
 0x22f   : > { %727 = vmatmul.mubr.msk.f32.vlgmr.msra.gmra.mrb[0].mxu1 %vm489_vm2, %v473_v42 }
 0x302   : > { %v559_v44 = vpop.f32.mrb[0].mxu1 }
 0x303   : > { %v560_v45 = vadd.f32 %v677_v43, %v559_v44  ;;  %v728_v46 = vpop.f32.mrb[1].mxu1 }
 0x305   : > { %v563_v47 = vadd.f32 %v560_v45, %v388_v34 }
 0x307   : > { %v564_v48 = vsel %vm358_vm0, %v563_v47, 0.0 }
 0x308   : > { %565 = vadd.xlane.f32.xlu1 %v564_v48 }
 0x395   : > { %v566_v49 = vpop.xlane.xlu1 %565 }
 0x396   : > { %v567_v50 = vmul.f32 0.03125, %v566_v49 }
 0x398   : > { %v568_v51 = vsub.f32 %v563_v47, %v567_v50 }
 0x39a   : > { %v569_v52 = vmul.f32 %v568_v51, %v568_v51 }
 0x39c   : > { %v570_v53 = vsel %vm358_vm0, %v569_v52, 0.0 }
 0x39d   : > { %571 = vadd.xlane.f32.xlu1 %v570_v53 }
 0x42a   : > { %v572_v54 = vpop.xlane.xlu1 %571 }
 0x42b   : > { %v573_v55 = vmul.f32 0.03125, %v572_v54 }
 0x42d   : > { %v574_v56 = vadd.f32 1e-05, %v573_v55 }
 0x42f   : > { %791 = vrsqrt.f32 %v574_v56 }
 0x439   : > { %v792_v57 = vpop.eup %791 }
 0x43a   : > { %v576_v59 = vmul.f32 %v792_v57, %v568_v51 }
 0x43c   : > { %v584_v61 = vmul.f32 %v679_v58, %v576_v59 }
 0x43e   : > { %v592_v62 = vadd.f32 %v680_v60, %v584_v61 }
 0x440   : > { %593 = vst.msk [vmem:[%s350_s27] sm:$0xff] %vm358_vm0, %v592_v62 }
 0x441   : > { %806 = shalt.err (!%p803_p3)
}
 0x442   : > { %s807_s11 = scalar_lea.hbm %s1036_s0, 128  ;;  %s811_s27 = scalar_lea.hbm %s1089_s10, 256 }
 0x443   : > { %p808_p4 = scmp.ne.s32.totalorder %s1036_s0, %s807_s11  ;;  %p812_p9 = scmp.lt.u32.totalorder %s1036_s0, %s1089_s10 }
 0x444   : > { %p813_p10 = scmp.lt.u32.totalorder %s811_s27, %s807_s11  ;;  %p815_p12 = scmp.lt.u32.totalorder %s807_s11, %s1036_s0 }
 0x445   : > { %p809_p7 = pnand %p808_p4, %p954_p5 }
 0x446   : > { %p814_p11 = por %p813_p10, %p812_p9 }
 0x447   : > { %p810_p8 = pneg %p809_p7 }
 0x448   : > { %p816_p13 = por %p815_p12, %p814_p11 }
 0x44a   : > { %p817_p0 = pnand %p816_p13, %p810_p8 }
 0x44c   : > { %820 = shalt.err (!%p817_p0)
}
 0x44d   : > { %747 = dma.vmem_to_hbm [thread:$0]  (%p954_p5), %s1038_s28, 128, %s1036_s0, %s595_s18  }
 0x44e PF: > { %p753_p1 = scmp.ge.s32.totalorder %s855_s16, 2  ;;  %s620_s20 = sand.u32 1, %s843_s13  }
 0x44f   : > { %s621_s17 = scalar_lea.sflag [#allocation3], %s620_s20 }
 0x450   : > { %p750_p2 = pnand %p753_p1, %p958_p6 }
 0x452   : > { %838 = dma.done.wait (!%p750_p2), %s621_s17, 128  }
 0x453   : > { %840 = vsyncadd (!%p750_p2), %s621_s17, 4294967168  ;;  %p20_p3 = scmp.ge.s32.totalorder %s941_s19, 4   ;;  %s1094_s13 = smov %s847_s14 }
 0x454   : > { %s1095_s14 = smov %s851_s15  ;;  %s1096_s15 = smov %s952_s22 }
 0x455   : > { %s1097_s16 = smov %s941_s19  ;;  %22 = sbr.rel (!%p20_p3) target bundleno = 5 (0x5), region = 95 }
 0x45c   :  { %626 = vsyncpa [#allocation3], 1 }
 0x45d   :  { %628 = vsyncpa [#allocation3 + $0x1], 1 }

// kernel: time_aware_encoder_layer.2
= control target key start
LH: loop header
LB: loop body
LE: loop exit
PB: predicated region body
PF: predicated region fallthrough
CT: control target
= control target key end

     0   :  { %12 = vsyncpa [#allocation3], 0  ;;  %s2075_s24 = smov [#allocation2]   ;;  %s2674_s0 = inlined_call_operand.vmem [shape: f32[2,8,32], index: 0, kind: input, shape index: {}]   ;;  %s2675_s1 = inlined_call_operand.vmem [shape: f32[32,96], index: 1, kind: input, shape index: {}]   ;;  %s2676_s2 = inlined_call_operand.vmem [shape: f32[1,96], index: 2, kind: input, shape index: {}]   ;;  %s2677_s3 = inlined_call_operand.vmem [shape: f32[2,8,8,32], index: 3, kind: input, shape index: {}]   ;;  %s2678_s4 = inlined_call_operand.hbm [shape: f32[2,8,8,32], index: 4, kind: input, shape index: {}]   ;;  %s2679_s5 = inlined_call_operand.vmem [shape: f32[4,8], index: 5, kind: input, shape index: {}]   ;;  %s2680_s6 = inlined_call_operand.vmem [shape: f32[8,4], index: 6, kind: input, shape index: {}]   ;;  %s2681_s7 = inlined_call_operand.vmem [shape: f32[8,32], index: 7, kind: output, shape index: {}]  }
   0x1   :  { %s26_s25 = sshll.u32 %s2075_s24, 4  ;;  %s2051_s28 = scalar_lea.hbm %s2678_s4, 1024  ;;  %s27_s25 = int_to_ptr.vmem [resolvable:$true] %s26_s25 }
   0x2   :  { %p2052_p0 = scmp.ne.s32.totalorder %s2678_s4, %s2051_s28  ;;  %s2053_s10 = scalar_lea.hbm %s2678_s4, 2048 }
   0x3   :  { %p2054_p1 = scmp.lt.u32.totalorder %s2053_s10, %s2051_s28  ;;  %p2055_p2 = scmp.lt.u32.totalorder %s2051_s28, %s2678_s4 }
   0x5   :  { %p2056_p3 = por %p2055_p2, %p2054_p1 }
   0x7   :  { %p2057_p4 = pnand %p2056_p3, %p2052_p0 }
   0x9   :  { %2060 = shalt.err (!%p2057_p4)
}
   0xa   :  { %s2061_s13 = scalar_lea.vmem %s27_s25, 1024  ;;  %p2066_p6 = scmp.lt.s32.totalorder %s27_s25, %s27_s25 }
   0xb   :  { %p2062_p5 = scmp.ne.s32.totalorder %s27_s25, %s2061_s13  ;;  %p2067_p7 = scmp.lt.s32.totalorder %s2061_s13, %s2061_s13 }
   0xd   :  { %p2068_p8 = por %p2067_p7, %p2066_p6 }
   0xf   :  { %p2069_p9 = pnand %p2068_p8, %p2062_p5 }
  0x11   :  { %2072 = shalt.err (!%p2069_p9)
}
  0x12   :  { %s2076_s14 = smov 128   ;;  %s2077_s15 = smov 8  }
  0x13   :  { %32 = dma.hbm_to_vmem [thread:$0]  %s2678_s4, 1024, %s27_s25, [#allocation3], %s2076_s14, %s2076_s14, %s2077_s15  }
  0x14   :  { %2073 = dma.done.wait [#allocation3], 1024  }
  0x15   :  { %2074 = vsyncadd [#allocation3], 4294966272  ;;  %v2078_v0 = vmov 0.0|0.0   ;;  %vm2079_vm0 = vmmov 0   ;;  %v2080_v1 = vmov 0.0   ;;  %v41_v2 = vld [vmem:[%s2675_s1] sm:$0xff]  ;;  %v147_v11 = vlaneseq }
  0x16   :  { %2000 = vmatprep.subr.bf16.mxu0 %v2078_v0  ;;  %1957 = vmatprep.mubr.msk.f32.mxu0 %vm2079_vm0, %v2080_v1  ;;  %v42_v3 = vld [vmem:[%s2675_s1 + $0x8] sm:$0xff]  ;;  %v43_v4 = vld [vmem:[%s2675_s1 + $0x10] sm:$0xff]  ;;  %v44_v6 = vld [vmem:[%s2675_s1 + $0x18] sm:$0xff]  ;;  %vm52_vm1 = vcmask 261120   ;;  %v2081_v9 = vmov 1966171168  }
  0x17   :  { %1960 = vmatprep.subr.mxu1 %v2080_v1  ;;  %1962 = vmatprep.mubr.msk.f32.mxu1 %vm2079_vm0, %v2080_v1  ;;  %v2001_v5 = vpack.c.bf16 %v42_v3, %v41_v2  ;;  %v2004_v7 = vpack.c.bf16 %v44_v6, %v43_v4  ;;  %v40_v8 = vld [vmem:[%s2674_s0] sm:$0xff]  ;;  %v145_v10 = vunpack.c.l.s4 %v2081_v9  ;;  %v2179_v13 = vshrl.u32 %v147_v11, 7  ;;  %s2082_s0 = smov 120   ;;  %s2083_s28 = smov 96   ;;  %v127_v28 = vld [vmem:[%s2677_s3 + $0x8] sm:$0xff]  ;;  %v128_v32 = vld [vmem:[%s2677_s3 + $0x10] sm:$0xff] }
  0x18   :  { %v1910_v14 = vld [vmem:[%s2676_s2] ss:$0 sm:$0xff]  ;;  %s2084_s2 = smov 80   ;;  %s2085_s29 = smov 88   ;;  %vm240_vm2 = vcmask 64512   ;;  %v132_v48 = vld [vmem:[%s2677_s3 + $0x30] sm:$0xff] }
  0x19   :  { %2002 = vmatpush3.bf16.msra.mxu0 %v2001_v5  ;;  %v146_v12 = vunpack.c.0.s8 %v145_v10  ;;  %v2196_v21 = vsub.s32 0, %v2179_v13  ;;  %v126_v25 = vld [vmem:[%s2677_s3] sm:$0xff]  ;;  %s2086_s9 = smov 72   ;;  %s2087_s10 = smov 112   ;;  %v129_v52 = vld [vmem:[%s2677_s3 + $0x18] sm:$0xff]  ;;  %v131_v55 = vld [vmem:[%s2677_s3 + $0x28] sm:$0xff] }
  0x1a   :  { %2003 = vmatprep.subr.bf16.mxu0 %v2078_v0  ;;  %s2088_s13 = smov 104   ;;  %v130_v40 = vld [vmem:[%s2677_s3 + $0x20] sm:$0xff]  ;;  %v2089_v61 = vmov 1   ;;  %v2090_v10 = vmov 0   ;;  %vm309_vm3 = vcmask 1041409   ;;  %vm311_vm4 = vcmask 1042434  }
  0x1b   :  { %v2185_v15 = vsub.s32 %v146_v12, %v2179_v13  ;;  %2031 = vset.pattern.permute.xlu1 %v2089_v61  ;;  %2030 = vset.pattern.permute.xlu0 %v2090_v10  ;;  %vm313_vm5 = vcmask 1043459   ;;  %vm315_vm6 = vcmask 1044484   ;;  %vm317_vm7 = vcmask 1045509   ;;  %s2095_s11 = smov 48   ;;  %s2096_s12 = smov 40  }
  0x1c   :  { %vm319_vm8 = vcmask 1046534   ;;  %vm321_vm9 = vcmask 1047559   ;;  %vm909_vm14 = vcmask 130112   ;;  %vm1329_vm15 = vcmask 195712  }
  0x1d   :  { %2005 = vmatpush3.bf16.msra.mxu0 %v2004_v7  ;;  %v133_v7 = vld [vmem:[%s2677_s3 + $0x38] sm:$0xff] }
  0x1e   :  { %1970 = vmatprep.subr.mxu0 %v2080_v1 }
  0x20   :  { %1958 = vmatmul.mubr.msk.f32.vlgmr.msra.gmra.mrb[0].mxu0 %vm52_vm1, %v40_v8 }
  0x21   :  { %1972 = vmatprep.mubr.msk.f32.mxu0 %vm2079_vm0, %v2080_v1 }
  0xf3   :  { %v122_v16 = vpop.f32.mrb[0].mxu0 }
  0xf4   :  { %v2187_v17 = vadd.f32 %v1910_v14, %v122_v16  ;;  %v1959_v18 = vpop.f32.mrb[1].mxu0 }
  0xf6   :  { %693 = vrot.lane.b32.xlu1 %v2187_v17, %s2082_s0  ;;  %265 = vrot.lane.b32.xlu0 %v2187_v17, %s2083_s28  ;;  %v150_v19 = vrot.slane %v2187_v17, %v2185_v15  ;;  %v143_v34 = vcombine.high %v2187_v17, %v2187_v17 }
  0xf8   :  { %v166_v20 = vrot.slane %v150_v19, %v2185_v15  ;;  %v158_v22 = vcombine.high %v150_v19, %v150_v19  ;;  %v157_v35 = vrot.slane %v143_v34, %v2185_v15 }
  0xfa   :  { %1115 = vrot.lane.b32.xlu1 %v2187_v17, %s2084_s2  ;;  %695 = vrot.lane.b32.xlu0 %v2187_v17, %s2085_s29  ;;  %v195_v23 = vrot.slane %v166_v20, %v2196_v21  ;;  %v180_v24 = vrot.slane %v158_v22, %v2185_v15  ;;  %v188_v30 = vcombine.high %v166_v20, %v166_v20 }
  0xfb   :  { %v173_v37 = vrot.slane %v157_v35, %v2185_v15  ;;  %v159_v47 = vcombine.high %v157_v35, %v157_v35 }
  0xfc   :  { %v232_v26 = vmul.f32 %v195_v23, %v126_v25  ;;  %v199_v27 = vrot.slane %v180_v24, %v2196_v21  ;;  %v203_v31 = vrot.slane %v188_v30, %v2196_v21  ;;  %v190_v46 = vcombine.high %v180_v24, %v180_v24 }
  0xfd   :  { %v211_v39 = vrot.slane %v173_v37, %v2196_v21  ;;  %v189_v44 = vcombine.high %v173_v37, %v173_v37  ;;  %v187_v51 = vrot.slane %v159_v47, %v2185_v15  ;;  %v276_v23 = vand.u32 127, %v147_v11 }
  0xfe   :  { %1535 = vrot.lane.b32.xlu1 %v2187_v17, %s2086_s9  ;;  %1113 = vrot.lane.b32.xlu0 %v2187_v17, %s2087_s10  ;;  %v233_v29 = vmul.f32 %v199_v27, %v127_v28  ;;  %v234_v33 = vmul.f32 %v203_v31, %v128_v32  ;;  %v241_v36 = vsel %vm240_vm2, %v232_v26, 0.0  ;;  %v207_v50 = vrot.slane %v190_v46, %v2196_v21  ;;  %s2093_s9 = smov 56  }
  0xff   :  { %v236_v42 = vmul.f32 %v211_v39, %v130_v40  ;;  %v219_v45 = vrot.slane %v189_v44, %v2196_v21  ;;  %v215_v54 = vrot.slane %v187_v51, %v2196_v21  ;;  %v191_v5 = vcombine.high %v187_v51, %v187_v51 }
 0x100   :  { %v244_v38 = vsel %vm240_vm2, %v233_v29, 0.0  ;;  %v247_v41 = vsel %vm240_vm2, %v234_v33, 0.0  ;;  %v235_v53 = vmul.f32 %v207_v50, %v129_v52  ;;  %v2297_v27 = vsub.s32 %v276_v23, %v2179_v13 }
 0x101   :  { %v253_v43 = vsel %vm240_vm2, %v236_v42, 0.0  ;;  %v238_v49 = vmul.f32 %v219_v45, %v132_v48  ;;  %v237_v56 = vmul.f32 %v215_v54, %v131_v55  ;;  %v223_v6 = vrot.slane %v191_v5, %v2196_v21  ;;  %v821_v5 = vld [vmem:[%s2680_s6] sm:$0xff] }
 0x102   :  { %1533 = vrot.lane.b32.xlu0 %v2187_v17, %s2088_s13  ;;  %645 = vrot.lane.b32.xlu1 %v232_v26, %s2082_s0  ;;  %v250_v2 = vsel %vm240_vm2, %v235_v53, 0.0 }
 0x103   :  { %v256_v3 = vsel %vm240_vm2, %v237_v56, 0.0  ;;  %v259_v4 = vsel %vm240_vm2, %v238_v49, 0.0  ;;  %v239_v8 = vmul.f32 %v223_v6, %v133_v7  ;;  %v2091_v6 = vmov 2  }
 0x104   :  { %v2092_v7 = vmov 3  }
 0x105   :  { %v262_v22 = vsel %vm240_vm2, %v239_v8, 0.0 }
 0x106   :  { %1065 = vrot.lane.b32.xlu1 %v232_v26, %s2087_s10  ;;  %647 = vrot.lane.b32.xlu0 %v233_v29, %s2082_s0 }
 0x10a   :  { %1485 = vrot.lane.b32.xlu1 %v232_v26, %s2088_s13  ;;  %1067 = vrot.lane.b32.xlu0 %v233_v29, %s2087_s10 }
 0x10e   :  { %1069 = vrot.lane.b32.xlu0 %v234_v33, %s2087_s10 }
 0x112   :  { %1487 = vrot.lane.b32.xlu0 %v233_v29, %s2088_s13 }
 0x116   :  { %1489 = vrot.lane.b32.xlu0 %v234_v33, %s2088_s13 }
 0x12e   :  { %242 = vadd.xlane.f32.xlu1 %v241_v36 }
 0x135   :  { %245 = vadd.xlane.f32.xlu0 %v244_v38 }
 0x139   :  { %248 = vadd.xlane.f32.xlu0 %v247_v41 }
 0x13d   :  { %254 = vadd.xlane.f32.xlu0 %v253_v43 }
 0x13f   :  { %649 = vrot.lane.b32.xlu1 %v234_v33, %s2082_s0 }
 0x143   :  { %653 = vrot.lane.b32.xlu1 %v236_v42, %s2082_s0 }
 0x147   :  { %1073 = vrot.lane.b32.xlu1 %v236_v42, %s2087_s10 }
 0x14b   :  { %1493 = vrot.lane.b32.xlu1 %v236_v42, %s2088_s13 }
 0x14f   :  { %657 = vrot.lane.b32.xlu1 %v238_v49, %s2082_s0 }
 0x153   :  { %651 = vrot.lane.b32.xlu0 %v235_v53, %s2082_s0  ;;  %1077 = vrot.lane.b32.xlu1 %v238_v49, %s2087_s10 }
 0x157   :  { %1497 = vrot.lane.b32.xlu1 %v238_v49, %s2088_s13  ;;  %655 = vrot.lane.b32.xlu0 %v237_v56, %s2082_s0 }
 0x15b   :  { %1071 = vrot.lane.b32.xlu0 %v235_v53, %s2087_s10 }
 0x15f   :  { %1075 = vrot.lane.b32.xlu0 %v237_v56, %s2087_s10 }
 0x163   :  { %1491 = vrot.lane.b32.xlu0 %v235_v53, %s2088_s13 }
 0x167   :  { %1495 = vrot.lane.b32.xlu0 %v237_v56, %s2088_s13 }
 0x168   :  { %v694_v57 = vpop.permute.xlu1 %693  ;;  %v266_v58 = vpop.permute.xlu0 %265 }
 0x169   :  { %1961 = vmatpush3.xpose.msk.msra.mxu1 %vm240_vm2, %v266_v58 }
 0x16a   :  { %1965 = vmatprep.subr.mxu1 %v2080_v1 }
 0x16c   :  { %1963 = vmatmul.mubr.msk.f32.vlgmr.msra.gmra.mrb[0].mxu1 %vm240_vm2, %v2187_v17  ;;  %v696_v59 = vpop.permute.xlu0 %695  ;;  %v1116_v60 = vpop.permute.xlu1 %1115 }
 0x16d   :  { %1971 = vmatpush3.xpose.msk.msra.mxu0 %vm240_vm2, %v696_v59  ;;  %1967 = vmatprep.mubr.msk.f32.mxu1 %vm2079_vm0, %v2080_v1 }
 0x16e   :  { %1980 = vmatprep.subr.mxu0 %v2080_v1 }
 0x170   :  { %1973 = vmatmul.mubr.msk.f32.vlgmr.msra.gmra.mrb[2].mxu0 %vm240_vm2, %v694_v57  ;;  %v1114_v62 = vpop.permute.xlu0 %1113  ;;  %v1536_v63 = vpop.permute.xlu1 %1535 }
 0x171   :  { %1981 = vmatpush3.xpose.msk.msra.mxu0 %vm240_vm2, %v1116_v60  ;;  %1982 = vmatprep.mubr.msk.f32.mxu0 %vm2079_vm0, %v2080_v1 }
 0x172   :  { %1990 = vmatprep.subr.mxu0 %v2080_v1 }
 0x174   :  { %1983 = vmatmul.mubr.msk.f32.vlgmr.msra.gmra.mrb[4].mxu0 %vm240_vm2, %v1114_v62  ;;  %v1534_v0 = vpop.permute.xlu0 %1533  ;;  %v646_v12 = vpop.permute.xlu1 %645 }
 0x175   :  { %1991 = vmatpush3.xpose.msk.msra.mxu0 %vm240_vm2, %v1536_v63  ;;  %1992 = vmatprep.mubr.msk.f32.mxu0 %vm2079_vm0, %v2080_v1  ;;  %v669_v26 = vsel %vm240_vm2, %v646_v12, 0.0 }
 0x178   :  { %1993 = vmatmul.mubr.msk.f32.vlgmr.msra.gmra.mrb[6].mxu0 %vm240_vm2, %v1534_v0  ;;  %v648_v9 = vpop.permute.xlu0 %647  ;;  %v1066_v15 = vpop.permute.xlu1 %1065 }
 0x179   :  { %v672_v19 = vsel %vm240_vm2, %v648_v9, 0.0  ;;  %v1089_v31 = vsel %vm240_vm2, %v1066_v15, 0.0 }
 0x17b   :  { %251 = vadd.xlane.f32.xlu1 %v250_v2 }
 0x17c   :  { %v1068_v14 = vpop.permute.xlu0 %1067  ;;  %v1486_v18 = vpop.permute.xlu1 %1485 }
 0x17d   :  { %v1092_v34 = vsel %vm240_vm2, %v1068_v14, 0.0  ;;  %v1509_v37 = vsel %vm240_vm2, %v1486_v18, 0.0 }
 0x17f   :  { %257 = vadd.xlane.f32.xlu1 %v256_v3 }
 0x180   :  { %v1070_v16 = vpop.permute.xlu0 %1069 }
 0x181   :  { %v1095_v40 = vsel %vm240_vm2, %v1070_v16, 0.0 }
 0x184   :  { %v1488_v20 = vpop.permute.xlu0 %1487 }
 0x185   :  { %v1512_v46 = vsel %vm240_vm2, %v1488_v20, 0.0 }
 0x186   :  { %260 = vadd.xlane.f32.xlu0 %v259_v4 }
 0x188   :  { %v1490_v25 = vpop.permute.xlu0 %1489 }
 0x189   :  { %v1515_v49 = vsel %vm240_vm2, %v1490_v25, 0.0 }
 0x190   :  { %659 = vrot.lane.b32.xlu1 %v239_v8, %s2082_s0 }
 0x194   :  { %1079 = vrot.lane.b32.xlu1 %v239_v8, %s2087_s10 }
 0x19c   :  { %1499 = vrot.lane.b32.xlu0 %v239_v8, %s2088_s13 }
 0x1b8   :  { %673 = vadd.xlane.f32.xlu1 %v672_v19 }
 0x1bb   :  { %v243_v24 = vpop.xlane.xlu1 %242  ;;  %263 = vadd.xlane.f32.xlu0 %v262_v22 }
 0x1bc   :  { %v280_v32 = vrot.slane %v243_v24, %v2297_v27 }
 0x1bf   :  { %v650_v28 = vpop.permute.xlu1 %649  ;;  %670 = vadd.xlane.f32.xlu0 %v669_v26 }
 0x1c0   :  { %v675_v29 = vsel %vm240_vm2, %v650_v28, 0.0 }
 0x1c1   :  { %676 = vadd.xlane.f32.xlu1 %v675_v29 }
 0x1c2   :  { %v246_v30 = vpop.xlane.xlu0 %245 }
 0x1c3   :  { %v284_v11 = vrot.slane %v246_v30, %v2297_v27  ;;  %v654_v33 = vpop.permute.xlu1 %653  ;;  %1090 = vadd.xlane.f32.xlu0 %v1089_v31 }
 0x1c4   :  { %v681_v43 = vsel %vm240_vm2, %v654_v33, 0.0 }
 0x1c5   :  { %v310_v35 = vsel %vm309_vm3, %v284_v11, %v280_v32  ;;  %1093 = vadd.xlane.f32.xlu1 %v1092_v34 }
 0x1c6   :  { %v249_v36 = vpop.xlane.xlu0 %248 }
 0x1c7   :  { %v288_v38 = vrot.slane %v249_v36, %v2297_v27  ;;  %v1074_v39 = vpop.permute.xlu1 %1073  ;;  %1510 = vadd.xlane.f32.xlu0 %v1509_v37 }
 0x1c8   :  { %v1101_v48 = vsel %vm240_vm2, %v1074_v39, 0.0 }
 0x1c9   :  { %v312_v41 = vsel %vm311_vm4, %v288_v38, %v310_v35  ;;  %1096 = vadd.xlane.f32.xlu1 %v1095_v40 }
 0x1ca   :  { %v255_v42 = vpop.xlane.xlu0 %254 }
 0x1cb   :  { %v296_v44 = vrot.slane %v255_v42, %v2297_v27  ;;  %v1494_v45 = vpop.permute.xlu1 %1493  ;;  %682 = vadd.xlane.f32.xlu0 %v681_v43 }
 0x1cc   :  { %v1521_v52 = vsel %vm240_vm2, %v1494_v45, 0.0 }
 0x1cd   :  { %1513 = vadd.xlane.f32.xlu1 %v1512_v46 }
 0x1ce   :  { %v652_v47 = vpop.permute.xlu0 %651 }
 0x1cf   :  { %1102 = vadd.xlane.f32.xlu0 %v1101_v48  ;;  %v658_v50 = vpop.permute.xlu1 %657  ;;  %v678_v53 = vsel %vm240_vm2, %v652_v47, 0.0 }
 0x1d0   :  { %v687_v55 = vsel %vm240_vm2, %v658_v50, 0.0 }
 0x1d1   :  { %1516 = vadd.xlane.f32.xlu1 %v1515_v49 }
 0x1d2   :  { %v656_v51 = vpop.permute.xlu0 %655 }
 0x1d3   :  { %1522 = vadd.xlane.f32.xlu0 %v1521_v52  ;;  %v1078_v56 = vpop.permute.xlu1 %1077  ;;  %v684_v57 = vsel %vm240_vm2, %v656_v51, 0.0 }
 0x1d4   :  { %v1107_v59 = vsel %vm240_vm2, %v1078_v56, 0.0 }
 0x1d5   :  { %679 = vadd.xlane.f32.xlu1 %v678_v53 }
 0x1d6   :  { %v1072_v54 = vpop.permute.xlu0 %1071 }
 0x1d7   :  { %688 = vadd.xlane.f32.xlu0 %v687_v55  ;;  %v1098_v60 = vsel %vm240_vm2, %v1072_v54, 0.0  ;;  %v1498_v3 = vpop.permute.xlu1 %1497 }
 0x1d8   :  { %v1527_v4 = vsel %vm240_vm2, %v1498_v3, 0.0 }
 0x1d9   :  { %685 = vadd.xlane.f32.xlu1 %v684_v57 }
 0x1da   :  { %v1076_v58 = vpop.permute.xlu0 %1075 }
 0x1db   :  { %1108 = vadd.xlane.f32.xlu0 %v1107_v59  ;;  %v1104_v62 = vsel %vm240_vm2, %v1076_v58, 0.0 }
 0x1dd   :  { %1099 = vadd.xlane.f32.xlu1 %v1098_v60 }
 0x1de   :  { %v1492_v61 = vpop.permute.xlu0 %1491 }
 0x1df   :  { %v1518_v63 = vsel %vm240_vm2, %v1492_v61, 0.0 }
 0x1e1   :  { %1105 = vadd.xlane.f32.xlu1 %v1104_v62 }
 0x1e2   :  { %v1496_v0 = vpop.permute.xlu0 %1495 }
 0x1e3   :  { %v1524_v2 = vsel %vm240_vm2, %v1496_v0, 0.0 }
 0x1e5   :  { %1519 = vadd.xlane.f32.xlu1 %v1518_v63 }
 0x1e9   :  { %1525 = vadd.xlane.f32.xlu1 %v1524_v2 }
 0x1ed   :  { %1528 = vadd.xlane.f32.xlu1 %v1527_v4 }
 0x1fe   :  { %824 = vperm.xlu1 %2031, %v821_v5  }
 0x202   :  { %2032 = vset.pattern.permute.xlu1 %v2091_v6 }
 0x203   :  { %1244 = vperm.xlu1 %2032, %v821_v5  }
 0x207   :  { %2033 = vset.pattern.permute.xlu1 %v2092_v7 }
 0x208   :  { %v252_v8 = vpop.xlane.xlu1 %251 }
 0x209   :  { %v292_v9 = vrot.slane %v252_v8, %v2297_v27 }
 0x20b   :  { %v314_v10 = vsel %vm313_vm5, %v292_v9, %v312_v41 }
 0x20c   :  { %v316_v12 = vsel %vm315_vm6, %v296_v44, %v314_v10  ;;  %v258_v14 = vpop.xlane.xlu1 %257 }
 0x20d   :  { %v300_v15 = vrot.slane %v258_v14, %v2297_v27 }
 0x20f   :  { %v318_v16 = vsel %vm317_vm7, %v300_v15, %v316_v12 }
 0x210   :  { %v660_v18 = vpop.permute.xlu1 %659 }
 0x211   :  { %v690_v19 = vsel %vm240_vm2, %v660_v18, 0.0 }
 0x212   :  { %691 = vadd.xlane.f32.xlu0 %v690_v19 }
 0x213   :  { %v261_v20 = vpop.xlane.xlu0 %260 }
 0x214   :  { %v304_v22 = vrot.slane %v261_v20, %v2297_v27  ;;  %v1080_v23 = vpop.permute.xlu1 %1079 }
 0x215   :  { %v1110_v24 = vsel %vm240_vm2, %v1080_v23, 0.0 }
 0x216   :  { %v320_v25 = vsel %vm319_vm8, %v304_v22, %v318_v16  ;;  %1111 = vadd.xlane.f32.xlu0 %v1110_v24  ;;  %v1918_v16 = vld [vmem:[%s2679_s5 + $0x1] ss:$0 sm:$0xff] }
 0x217   :  { %v1500_v26 = vpop.permute.xlu0 %1499 }
 0x218   :  { %v1530_v28 = vsel %vm240_vm2, %v1500_v26, 0.0 }
 0x227   :  { %1531 = vadd.xlane.f32.xlu1 %v1530_v28 }
 0x22c   :  { %403 = vperm.xlu0 %2030, %v821_v5  }
 0x230   :  { %2034 = vset.pattern.permute.xlu0 %v2092_v7 }
 0x238   :  { %1664 = vperm.xlu1 %2033, %v821_v5  }
 0x23f   :  { %v394_v29 = vpop.f32.mrb[0].mxu1 }
 0x240   :  { %v1964_v30 = vpop.f32.mrb[1].mxu1 }
 0x243   :  { %v2337_v31 = vpop.f32.mrb[2].mxu0 }
 0x244   :  { %v1974_v32 = vpop.f32.mrb[3].mxu0 }
 0x245   :  { %v674_v40 = vpop.xlane.xlu1 %673 }
 0x246   :  { %v712_v59 = vrot.slane %v674_v40, %v2297_v27 }
 0x247   :  { %v2339_v11 = vpop.f32.mrb[4].mxu0 }
 0x248   :  { %v264_v33 = vpop.xlane.xlu0 %263  ;;  %v1984_v34 = vpop.f32.mrb[5].mxu0 }
 0x249   :  { %v308_v35 = vrot.slane %v264_v33, %v2297_v27 }
 0x24b   :  { %v2342_v36 = vpop.f32.mrb[6].mxu0  ;;  %v322_v37 = vsel %vm321_vm9, %v308_v35, %v320_v25 }
 0x24c   :  { %v1994_v38 = vpop.f32.mrb[7].mxu0  ;;  %v2345_v39 = vadd.f32 %v394_v29, %v322_v37  ;;  %v671_v46 = vpop.xlane.xlu0 %670 }
 0x24d   :  { %v708_v57 = vrot.slane %v671_v46, %v2297_v27 }
 0x24e   :  { %v677_v41 = vpop.xlane.xlu1 %676 }
 0x24f   :  { %v716_v60 = vrot.slane %v677_v41, %v2297_v27  ;;  %v737_v62 = vsel %vm309_vm3, %v712_v59, %v708_v57 }
 0x250   :  { %v1091_v48 = vpop.xlane.xlu0 %1090 }
 0x251   :  { %v738_v2 = vsel %vm311_vm4, %v716_v60, %v737_v62  ;;  %v1128_v5 = vrot.slane %v1091_v48, %v2297_v27  ;;  %v398_v60 = vmul.f32 0.35355338, %v2345_v39 }
 0x252   :  { %v1094_v42 = vpop.xlane.xlu1 %1093 }
 0x253   :  { %v1132_v0 = vrot.slane %v1094_v42, %v2297_v27 }
 0x254   :  { %v2351_v50 = vpop.xlane.xlu0 %1510 }
 0x255   :  { %v1157_v12 = vsel %vm309_vm3, %v1132_v0, %v1128_v5  ;;  %v1548_v59 = vrot.slane %v2351_v50, %v2297_v27 }
 0x256   :  { %v1097_v43 = vpop.xlane.xlu1 %1096 }
 0x257   :  { %v1136_v3 = vrot.slane %v1097_v43, %v2297_v27  ;;  %v1922_v43 = vld [vmem:[%s2679_s5 + $0x2] ss:$0 sm:$0xff] }
 0x258   :  { %v683_v52 = vpop.xlane.xlu0 %682 }
 0x259   :  { %v724_v9 = vrot.slane %v683_v52, %v2297_v27  ;;  %v1158_v14 = vsel %vm311_vm4, %v1136_v3, %v1157_v12 }
 0x25a   :  { %v2347_v44 = vpop.xlane.xlu1 %1513 }
 0x25b   :  { %v1552_v52 = vrot.slane %v2347_v44, %v2297_v27 }
 0x25c   :  { %v1103_v54 = vpop.xlane.xlu0 %1102 }
 0x25d   :  { %v1144_v23 = vrot.slane %v1103_v54, %v2297_v27  ;;  %v1577_v62 = vsel %vm309_vm3, %v1552_v52, %v1548_v59  ;;  %v2450_v52 = vsub.s32 3, %v2179_v13  ;;  %v2462_v59 = vsub.s32 5, %v2179_v13 }
 0x25e   :  { %v2349_v45 = vpop.xlane.xlu1 %1516 }
 0x25f   :  { %v1556_v54 = vrot.slane %v2349_v45, %v2297_v27 }
 0x260   :  { %v2355_v56 = vpop.xlane.xlu0 %1522 }
 0x261   :  { %v1578_v44 = vsel %vm311_vm4, %v1556_v54, %v1577_v62  ;;  %v1564_v39 = vrot.slane %v2355_v56, %v2297_v27  ;;  %v2467_v62 = vsub.s32 6, %v2179_v13 }
 0x262   :  { %v680_v47 = vpop.xlane.xlu1 %679 }
 0x263   :  { %v720_v63 = vrot.slane %v680_v47, %v2297_v27 }
 0x264   :  { %v689_v61 = vpop.xlane.xlu0 %688 }
 0x265   :  { %v739_v6 = vsel %vm313_vm5, %v720_v63, %v738_v2  ;;  %v732_v24 = vrot.slane %v689_v61, %v2297_v27 }
 0x266   :  { %v686_v49 = vpop.xlane.xlu1 %685  ;;  %v740_v15 = vsel %vm315_vm6, %v724_v9, %v739_v6  ;;  %v1926_v9 = vld [vmem:[%s2679_s5 + $0x3] ss:$0 sm:$0xff] }
 0x267   :  { %v728_v7 = vrot.slane %v686_v49, %v2297_v27 }
 0x268   :  { %v1109_v10 = vpop.xlane.xlu0 %1108 }
 0x269   :  { %v741_v19 = vsel %vm317_vm7, %v728_v7, %v740_v15  ;;  %v1152_v34 = vrot.slane %v1109_v10, %v2297_v27 }
 0x26a   :  { %v1100_v51 = vpop.xlane.xlu1 %1099  ;;  %v742_v30 = vsel %vm319_vm8, %v732_v24, %v741_v19 }
 0x26b   :  { %v1140_v8 = vrot.slane %v1100_v51, %v2297_v27 }
 0x26d   :  { %v1159_v20 = vsel %vm313_vm5, %v1140_v8, %v1158_v14 }
 0x26e   :  { %v1106_v53 = vpop.xlane.xlu1 %1105  ;;  %v1160_v29 = vsel %vm315_vm6, %v1144_v23, %v1159_v20 }
 0x26f   :  { %v1148_v22 = vrot.slane %v1106_v53, %v2297_v27 }
 0x271   :  { %v1161_v32 = vsel %vm317_vm7, %v1148_v22, %v1160_v29 }
 0x272   :  { %v2353_v55 = vpop.xlane.xlu1 %1519  ;;  %v1162_v41 = vsel %vm319_vm8, %v1152_v34, %v1161_v32 }
 0x276   :  { %v2358_v58 = vpop.xlane.xlu1 %1525 }
 0x277   :  { %v1568_v50 = vrot.slane %v2358_v58, %v2297_v27 }
 0x27a   :  { %v2367_v4 = vpop.xlane.xlu1 %1528 }
 0x27e   :  { %v825_v18 = vpop.permute.xlu1 %824 }
 0x27f   :  { %v831_v28 = vmul.f32 %v1918_v16, %v825_v18 }
 0x281   :  { %vm832_vm10 = vcmp.gt.f32.partialorder %v831_v28, 0.5 }
 0x282   :  { %v1245_v46 = vpop.permute.xlu1 %1244 }
 0x283   :  { %v1251_v51 = vmul.f32 %v1922_v43, %v1245_v46  ;;  %v2445_v46 = vsub.s32 1, %v2179_v13 }
 0x285   :  { %vm1252_vm11 = vcmp.gt.f32.partialorder %v1251_v51, 0.5 }
 0x29f   :  { %v692_v25 = vpop.xlane.xlu0 %691 }
 0x2a0   :  { %v736_v26 = vrot.slane %v692_v25, %v2297_v27 }
 0x2a2   :  { %v743_v33 = vsel %vm321_vm9, %v736_v26, %v742_v30 }
 0x2a3   :  { %v1112_v35 = vpop.xlane.xlu0 %1111  ;;  %v816_v37 = vadd.f32 %v2337_v31, %v743_v33  ;;  %v1914_v31 = vld [vmem:[%s2679_s5] ss:$0 sm:$0xff]  ;;  %s2094_s5 = smov 64  }
 0x2a4   :  { %v1156_v38 = vrot.slane %v1112_v35, %v2297_v27 }
 0x2a5   :  { %v819_v40 = vmul.f32 0.35355338, %v816_v37 }
 0x2a6   :  { %v1163_v42 = vsel %vm321_vm9, %v1156_v38, %v1162_v41 }
 0x2a7   :  { %v833_v47 = vsel %vm832_vm10, -4.2949673e+09, %v819_v40  ;;  %v1236_v48 = vadd.f32 %v2339_v11, %v1163_v42  ;;  %v1560_v11 = vrot.slane %v2353_v55, %v2297_v27  ;;  %v1572_v55 = vrot.slane %v2367_v4, %v2297_v27 }
 0x2a8   :  { %v834_v49 = vsel %vm240_vm2, %v833_v47, -inf }
 0x2a9   :  { %835 = vmax.xlane.f32.xlu0 %v834_v49  ;;  %v1239_v61 = vmul.f32 0.35355338, %v1236_v48  ;;  %v1579_v45 = vsel %vm313_vm5, %v1560_v11, %v1578_v44 }
 0x2aa   :  { %v1580_v3 = vsel %vm315_vm6, %v1564_v39, %v1579_v45 }
 0x2ab   :  { %v404_v53 = vpop.permute.xlu0 %403  ;;  %v1253_v2 = vsel %vm1252_vm11, -4.2949673e+09, %v1239_v61  ;;  %v1581_v7 = vsel %vm317_vm7, %v1568_v50, %v1580_v3 }
 0x2ac   :  { %v410_v57 = vmul.f32 %v1914_v31, %v404_v53  ;;  %v1254_v6 = vsel %vm240_vm2, %v1253_v2, -inf  ;;  %v1582_v58 = vsel %vm319_vm8, %v1572_v55, %v1581_v7 }
 0x2ae   :  { %vm411_vm12 = vcmp.gt.f32.partialorder %v410_v57, 0.5  ;;  %v2459_v57 = vsub.s32 4, %v2179_v13 }
 0x2af   :  { %v412_v63 = vsel %vm411_vm12, -4.2949673e+09, %v398_v60 }
 0x2b0   :  { %v413_v0 = vsel %vm240_vm2, %v412_v63, -inf }
 0x2b1   :  { %414 = vmax.xlane.f32.xlu1 %v413_v0 }
 0x2b4   :  { %v1532_v5 = vpop.xlane.xlu1 %1531 }
 0x2b5   :  { %v1576_v8 = vrot.slane %v1532_v5, %v2297_v27  ;;  %1255 = vmax.xlane.f32.xlu1 %v1254_v6 }
 0x2b7   :  { %v1583_v56 = vsel %vm321_vm9, %v1576_v8, %v1582_v58 }
 0x2b8   :  { %v1665_v10 = vpop.permute.xlu1 %1664  ;;  %v1656_v4 = vadd.f32 %v2342_v36, %v1583_v56 }
 0x2b9   :  { %v1671_v12 = vmul.f32 %v1926_v9, %v1665_v10 }
 0x2ba   :  { %v1659_v14 = vmul.f32 0.35355338, %v1656_v4 }
 0x2bb   :  { %vm1672_vm13 = vcmp.gt.f32.partialorder %v1671_v12, 0.5 }
 0x2bc   :  { %v1673_v15 = vsel %vm1672_vm13, -4.2949673e+09, %v1659_v14 }
 0x2bd   :  { %v1674_v16 = vsel %vm240_vm2, %v1673_v15, -inf }
 0x2be   :  { %1675 = vmax.xlane.f32.xlu1 %v1674_v16 }
 0x2cf   :  { %966 = vrot.lane.b32.xlu1 %v2187_v17, %s2093_s9 }
 0x336   :  { %v836_v27 = vpop.xlane.xlu0 %835 }
 0x337   :  { %v837_v18 = vsub.f32 %v833_v47, %v836_v27 }
 0x339   :  { %v838_v19 = vmul.f32 1.442695, %v837_v18 }
 0x33b   :  { %2035 = vpow2.f32 %v838_v19 }
 0x33e   :  { %v415_v20 = vpop.xlane.xlu1 %414 }
 0x33f   :  { %v416_v22 = vsub.f32 %v412_v63, %v415_v20  ;;  %v2470_v63 = vsub.s32 7, %v2179_v13 }
 0x341   :  { %v417_v23 = vmul.f32 1.442695, %v416_v22 }
 0x342   :  { %v1256_v25 = vpop.xlane.xlu1 %1255 }
 0x343   :  { %2037 = vpow2.f32 %v417_v23  ;;  %v1257_v35 = vsub.f32 %v1253_v2, %v1256_v25 }
 0x345   :  { %v2036_v24 = vpop.eup %2035  ;;  %v1258_v37 = vmul.f32 1.442695, %v1257_v35 }
 0x346   :  { %v840_v36 = vsel %vm240_vm2, %v2036_v24, 0.0 }
 0x347   :  { %841 = vadd.xlane.f32.xlu1 %v840_v36 }
 0x34b   :  { %v1676_v26 = vpop.xlane.xlu1 %1675 }
 0x34c   :  { %v1677_v28 = vsub.f32 %v1673_v15, %v1676_v26 }
 0x34d   :  { %v2038_v29 = vpop.eup %2037 }
 0x34e   :  { %v1678_v30 = vmul.f32 1.442695, %v1677_v28  ;;  %v419_v32 = vsel %vm240_vm2, %v2038_v29, 0.0 }
 0x34f   :  { %420 = vadd.xlane.f32.xlu0 %v419_v32  ;;  %v967_v41 = vpop.permute.xlu1 %966 }
 0x350   :  { %2039 = vpow2.f32 %v1678_v30  ;;  %v2522_v30 = vld [vmem:[#allocation2] sm:$0xff] }
 0x351   :  { %2041 = vpow2.f32 %v1258_v37  ;;  %v2526_v37 = vld [vmem:[#allocation2 + $0x18] sm:$0xff] }
 0x35a   :  { %v2436_v33 = vpop.eup %2039 }
 0x35b   :  { %v1680_v34 = vsel %vm240_vm2, %v2436_v33, 0.0  ;;  %v2042_v38 = vpop.eup %2041 }
 0x35c   :  { %1681 = vadd.xlane.f32.xlu1 %v1680_v34  ;;  %v1260_v40 = vsel %vm240_vm2, %v2042_v38, 0.0 }
 0x365   :  { %544 = vrot.lane.b32.xlu0 %v2187_v17, %s2094_s5 }
 0x36d   :  { %1386 = vrot.lane.b32.xlu1 %v2187_v17, %s2095_s11 }
 0x384   :  { %1261 = vadd.xlane.f32.xlu0 %v1260_v40 }
 0x39a   :  { %1806 = vrot.lane.b32.xlu0 %v2187_v17, %s2096_s12  ;;  %v2453_v17 = vsub.s32 2, %v2179_v13 }
 0x3d4   :  { %v842_v42 = vpop.xlane.xlu1 %841 }
 0x3d5   :  { %2043 = vrcp.f32 %v842_v42 }
 0x3dc   :  { %v421_v43 = vpop.xlane.xlu0 %420 }
 0x3dd   :  { %2045 = vrcp.f32 %v421_v43 }
 0x3df   :  { %v2044_v47 = vpop.eup %2043 }
 0x3e0   :  { %v844_v48 = vmul.f32 %v2044_v47, %v2036_v24  ;;  %v545_v49 = vpop.permute.xlu0 %544 }
 0x3e1   :  { %1966 = vmatpush3.msra.mxu1 %v545_v49 }
 0x3e2   :  { %v855_v31 = vrot.slane %v844_v48, %v2445_v46  ;;  %v848_v51 = vrot.slane %v844_v48, %v2196_v21  ;;  %1975 = vmatprep.subr.mxu1 %v2080_v1  ;;  %v869_v53 = vrot.slane %v844_v48, %v2450_v52  ;;  %v862_v54 = vrot.slane %v844_v48, %v2453_v17 }
 0x3e3   :  { %v876_v44 = vrot.slane %v844_v48, %v2459_v57  ;;  %v883_v0 = vrot.slane %v844_v48, %v2462_v59  ;;  %v890_v6 = vrot.slane %v844_v48, %v2467_v62  ;;  %v897_v7 = vrot.slane %v844_v48, %v2470_v63 }
 0x3e4   :  { %857 = vbcast.lane.b32.xlu0 %v855_v31, 256  ;;  %850 = vbcast.lane.b32.xlu1 %v848_v51, 256 }
 0x3e7   :  { %v2046_v11 = vpop.eup %2045 }
 0x3e8   :  { %v2464_v60 = vmul.f32 %v2046_v11, %v2038_v29  ;;  %871 = vbcast.lane.b32.xlu0 %v869_v53, 256  ;;  %864 = vbcast.lane.b32.xlu1 %v862_v54, 256  ;;  %v2520_v29 = vld [vmem:[#allocation2 + $0x8] sm:$0xff]  ;;  %v2534_v54 = vld [vmem:[#allocation2 + $0x20] sm:$0xff] }
 0x3e9   :  { %v1682_v61 = vpop.xlane.xlu1 %1681  ;;  %v2536_v11 = vld [vmem:[#allocation2 + $0x28] sm:$0xff] }
 0x3ea   :  { %1968 = vmatmul.mubr.msk.f32.vlgmr.msra.gmra.mrb[2].mxu1 %vm240_vm2, %v2464_v60  ;;  %v441_v45 = vrot.slane %v2464_v60, %v2453_v17  ;;  %v455_v50 = vrot.slane %v2464_v60, %v2459_v57  ;;  %v469_v13 = vrot.slane %v2464_v60, %v2467_v62  ;;  %v434_v2 = vrot.slane %v2464_v60, %v2445_v46 }
 0x3eb   :  { %1976 = vmatpush3.msra.mxu1 %v967_v41  ;;  %1977 = vmatprep.mubr.msk.f32.mxu1 %vm2079_vm0, %v2080_v1  ;;  %v448_v39 = vrot.slane %v2464_v60, %v2450_v52  ;;  %v462_v55 = vrot.slane %v2464_v60, %v2462_v59  ;;  %v476_v3 = vrot.slane %v2464_v60, %v2470_v63 }
 0x3ec   :  { %878 = vbcast.lane.b32.xlu0 %v876_v44, 256  ;;  %885 = vbcast.lane.b32.xlu1 %v883_v0, 256 }
 0x3ed   :  { %1985 = vmatprep.subr.mxu1 %v2080_v1  ;;  %v1387_v5 = vpop.permute.xlu1 %1386 }
 0x3ee   :  { %1978 = vmatmul.mubr.msk.f32.vlgmr.msra.gmra.mrb[4].mxu1 %vm240_vm2, %v844_v48 }
 0x3ef   :  { %1986 = vmatpush3.msra.mxu1 %v1387_v5  ;;  %1987 = vmatprep.mubr.msk.f32.mxu1 %vm2079_vm0, %v2080_v1 }
 0x3f0   :  { %892 = vbcast.lane.b32.xlu0 %v890_v6, 256  ;;  %899 = vbcast.lane.b32.xlu1 %v897_v7, 256 }
 0x3f1   :  { %1995 = vmatprep.subr.mxu1 %v2080_v1 }
 0x411   :  { %v1262_v8 = vpop.xlane.xlu0 %1261 }
 0x412   :  { %2047 = vrcp.f32 %v1262_v8 }
 0x413   :  { %2049 = vrcp.f32 %v1682_v61 }
 0x415   :  { %v1807_v10 = vpop.permute.xlu0 %1806 }
 0x41c   :  { %v2048_v58 = vpop.eup %2047 }
 0x41d   :  { %v1264_v9 = vmul.f32 %v2048_v58, %v2042_v38  ;;  %v2050_v56 = vpop.eup %2049  ;;  %v2528_v38 = vld [vmem:[#allocation2 + $0x10] sm:$0xff] }
 0x41e   :  { %v1684_v14 = vmul.f32 %v2050_v56, %v2436_v33 }
 0x41f   :  { %1988 = vmatmul.mubr.msk.f32.vlgmr.msra.gmra.mrb[6].mxu1 %vm240_vm2, %v1264_v9  ;;  %v1268_v4 = vrot.slane %v1264_v9, %v2196_v21  ;;  %v1275_v12 = vrot.slane %v1264_v9, %v2445_v46  ;;  %v1296_v15 = vrot.slane %v1264_v9, %v2459_v57  ;;  %v1282_v16 = vrot.slane %v1264_v9, %v2453_v17 }
 0x420   :  { %1996 = vmatpush3.msra.mxu1 %v1807_v10  ;;  %1997 = vmatprep.mubr.msk.f32.mxu1 %vm2079_vm0, %v2080_v1  ;;  %v1310_v27 = vrot.slane %v1264_v9, %v2467_v62  ;;  %v1289_v18 = vrot.slane %v1264_v9, %v2450_v52  ;;  %v1317_v1 = vrot.slane %v1264_v9, %v2470_v63  ;;  %vm1749_vm0 = vcmask 261312  }
 0x421   :  { %1270 = vbcast.lane.b32.xlu0 %v1268_v4, 256  ;;  %1277 = vbcast.lane.b32.xlu1 %v1275_v12, 256  ;;  %v1303_v19 = vrot.slane %v1264_v9, %v2462_v59  ;;  %v1695_v20 = vrot.slane %v1684_v14, %v2445_v46  ;;  %v1688_v22 = vrot.slane %v1684_v14, %v2196_v21 }
 0x422   :  { %v1709_v23 = vrot.slane %v1684_v14, %v2450_v52  ;;  %v1702_v24 = vrot.slane %v1684_v14, %v2453_v17  ;;  %v1723_v36 = vrot.slane %v1684_v14, %v2462_v59  ;;  %v1716_v25 = vrot.slane %v1684_v14, %v2459_v57 }
 0x423   :  { %1998 = vmatmul.mubr.msk.f32.vlgmr.msra.gmra.mrb[8].mxu1 %vm240_vm2, %v1684_v14  ;;  %v1730_v26 = vrot.slane %v1684_v14, %v2467_v62  ;;  %v1737_v28 = vrot.slane %v1684_v14, %v2470_v63 }
 0x425   :  { %1298 = vbcast.lane.b32.xlu0 %v1296_v15, 256  ;;  %1284 = vbcast.lane.b32.xlu1 %v1282_v16, 256  ;;  %v2542_v15 = vld [vmem:[#allocation2 + $0x30] sm:$0xff]  ;;  %v2544_v16 = vld [vmem:[#allocation2 + $0x38] sm:$0xff] }
 0x429   :  { %1312 = vbcast.lane.b32.xlu0 %v1310_v27, 256  ;;  %1291 = vbcast.lane.b32.xlu1 %v1289_v18, 256 }
 0x42d   :  { %1319 = vbcast.lane.b32.xlu0 %v1317_v1, 256  ;;  %1305 = vbcast.lane.b32.xlu1 %v1303_v19, 256 }
 0x431   :  { %1697 = vbcast.lane.b32.xlu1 %v1695_v20, 256  ;;  %1690 = vbcast.lane.b32.xlu0 %v1688_v22, 256 }
 0x435   :  { %1711 = vbcast.lane.b32.xlu1 %v1709_v23, 256  ;;  %1704 = vbcast.lane.b32.xlu0 %v1702_v24, 256 }
 0x439   :  { %1725 = vbcast.lane.b32.xlu1 %v1723_v36, 256  ;;  %1718 = vbcast.lane.b32.xlu0 %v1716_v25, 256 }
 0x43d   :  { %1732 = vbcast.lane.b32.xlu1 %v1730_v26, 256  ;;  %1739 = vbcast.lane.b32.xlu0 %v1737_v28, 256 }
 0x456   :  { %v858_v32 = vpop.permute.xlu0 %857  ;;  %v851_v33 = vpop.permute.xlu1 %850 }
 0x457   :  { %v902_v34 = vmul.f32 %v858_v32, %v2520_v29  ;;  %v901_v35 = vmul.f32 %v851_v33, %v2522_v30 }
 0x459   :  { %v917_v40 = vsel %vm909_vm14, %v902_v34, 0.0  ;;  %v910_v41 = vsel %vm909_vm14, %v901_v35, 0.0 }
 0x45a   :  { %v918_v42 = vrot.slane %v917_v40, 4  ;;  %v911_v43 = vrot.slane %v910_v41, 4  ;;  %v872_v47 = vpop.permute.xlu0 %871  ;;  %v865_v48 = vpop.permute.xlu1 %864 }
 0x45b   :  { %v904_v49 = vmul.f32 %v872_v47, %v2526_v37  ;;  %v903_v31 = vmul.f32 %v865_v48, %v2528_v38 }
 0x45c   :  { %v919_v51 = vadd.f32 %v918_v42, %v917_v40  ;;  %v912_v53 = vadd.f32 %v911_v43, %v910_v41 }
 0x45d   :  { %v931_v61 = vsel %vm909_vm14, %v904_v49, 0.0  ;;  %v924_v44 = vsel %vm909_vm14, %v903_v31, 0.0 }
 0x45e   :  { %v920_v0 = vrot.slane %v919_v51, 2  ;;  %v913_v5 = vrot.slane %v912_v53, 2  ;;  %v932_v6 = vrot.slane %v931_v61, 4  ;;  %v925_v7 = vrot.slane %v924_v44, 4  ;;  %v879_v8 = vpop.permute.xlu0 %878  ;;  %v886_v58 = vpop.permute.xlu1 %885 }
 0x45f   :  { %v905_v9 = vmul.f32 %v879_v8, %v2534_v54  ;;  %v906_v56 = vmul.f32 %v886_v58, %v2536_v11 }
 0x460   :  { %v921_v10 = vadd.f32 %v920_v0, %v919_v51  ;;  %v914_v4 = vadd.f32 %v913_v5, %v912_v53  ;;  %v933_v12 = vadd.f32 %v932_v6, %v931_v61  ;;  %v926_v14 = vadd.f32 %v925_v7, %v924_v44 }
 0x461   :  { %v938_v27 = vsel %vm909_vm14, %v905_v9, 0.0  ;;  %v945_v18 = vsel %vm909_vm14, %v906_v56, 0.0 }
 0x462   :  { %v922_v1 = vrot.slane %v921_v10, 1  ;;  %v915_v19 = vrot.slane %v914_v4, 1  ;;  %v934_v20 = vrot.slane %v933_v12, 2  ;;  %v927_v22 = vrot.slane %v926_v14, 2  ;;  %v893_v23 = vpop.permute.xlu0 %892  ;;  %v900_v24 = vpop.permute.xlu1 %899 }
 0x463   :  { %v939_v36 = vrot.slane %v938_v27, 4  ;;  %v946_v25 = vrot.slane %v945_v18, 4  ;;  %v907_v26 = vmul.f32 %v893_v23, %v2542_v15  ;;  %v908_v28 = vmul.f32 %v900_v24, %v2544_v16 }
 0x464   :  { %v923_v32 = vadd.f32 %v922_v1, %v921_v10  ;;  %v935_v33 = vadd.f32 %v934_v20, %v933_v12  ;;  %v928_v34 = vadd.f32 %v927_v22, %v926_v14  ;;  %v916_v43 = vadd.f32 %v915_v19, %v914_v4 }
 0x465   :  { %v940_v35 = vadd.f32 %v939_v36, %v938_v27  ;;  %v947_v40 = vadd.f32 %v946_v25, %v945_v18  ;;  %v952_v41 = vsel %vm909_vm14, %v907_v26, 0.0  ;;  %v959_v42 = vsel %vm909_vm14, %v908_v28, 0.0 }
 0x466   :  { %v936_v47 = vrot.slane %v935_v33, 1  ;;  %v929_v48 = vrot.slane %v928_v34, 1  ;;  %v953_v49 = vrot.slane %v952_v41, 4  ;;  %v960_v53 = vrot.slane %v959_v42, 4 }
 0x467   :  { %v941_v31 = vrot.slane %v940_v35, 2  ;;  %v948_v51 = vrot.slane %v947_v40, 2  ;;  %v977_v7 = vsel %vm309_vm3, %v923_v32, %v916_v43 }
 0x468   :  { %v930_v61 = vadd.f32 %v929_v48, %v928_v34  ;;  %v954_v44 = vadd.f32 %v953_v49, %v952_v41  ;;  %v961_v6 = vadd.f32 %v960_v53, %v959_v42  ;;  %v937_v8 = vadd.f32 %v936_v47, %v935_v33 }
 0x469   :  { %v942_v0 = vadd.f32 %v941_v31, %v940_v35  ;;  %v949_v5 = vadd.f32 %v948_v51, %v947_v40 }
 0x46a   :  { %v955_v58 = vrot.slane %v954_v44, 2  ;;  %v978_v9 = vsel %vm311_vm4, %v930_v61, %v977_v7  ;;  %v962_v4 = vrot.slane %v961_v6, 2 }
 0x46b   :  { %v943_v56 = vrot.slane %v942_v0, 1  ;;  %v950_v10 = vrot.slane %v949_v5, 1  ;;  %v979_v19 = vsel %vm313_vm5, %v937_v8, %v978_v9 }
 0x46c   :  { %v956_v12 = vadd.f32 %v955_v58, %v954_v44  ;;  %v963_v18 = vadd.f32 %v962_v4, %v961_v6 }
 0x46d   :  { %v944_v14 = vadd.f32 %v943_v56, %v942_v0  ;;  %v951_v27 = vadd.f32 %v950_v10, %v949_v5 }
 0x46e   :  { %v957_v1 = vrot.slane %v956_v12, 1  ;;  %v964_v20 = vrot.slane %v963_v18, 1 }
 0x46f   :  { %v980_v22 = vsel %vm315_vm6, %v944_v14, %v979_v19 }
 0x470   :  { %v958_v23 = vadd.f32 %v957_v1, %v956_v12  ;;  %v965_v24 = vadd.f32 %v964_v20, %v963_v18  ;;  %v981_v36 = vsel %vm317_vm7, %v951_v27, %v980_v22 }
 0x472   :  { %v982_v25 = vsel %vm319_vm8, %v958_v23, %v981_v36 }
 0x473   :  { %v983_v26 = vsel %vm321_vm9, %v965_v24, %v982_v25 }
 0x474   :  { %984 = vrot.lane.b32.xlu1 %v983_v26, %s2082_s0  ;;  %s2097_s0 = smov 16  }
 0x493   :  { %v1271_v28 = vpop.permute.xlu0 %1270  ;;  %v1278_v32 = vpop.permute.xlu1 %1277 }
 0x494   :  { %v1321_v33 = vmul.f32 %v1271_v28, %v2522_v30  ;;  %v1322_v34 = vmul.f32 %v1278_v32, %v2520_v29 }
 0x496   :  { %v1330_v35 = vsel %vm1329_vm15, %v1321_v33, 0.0  ;;  %v1337_v40 = vsel %vm1329_vm15, %v1322_v34, 0.0 }
 0x497   :  { %v1331_v41 = vrot.slane %v1330_v35, 4  ;;  %v1338_v42 = vrot.slane %v1337_v40, 4  ;;  %v1299_v43 = vpop.permute.xlu0 %1298  ;;  %v1285_v47 = vpop.permute.xlu1 %1284 }
 0x498   :  { %v1325_v48 = vmul.f32 %v1299_v43, %v2534_v54  ;;  %v1323_v49 = vmul.f32 %v1285_v47, %v2528_v38 }
 0x499   :  { %v1332_v31 = vadd.f32 %v1331_v41, %v1330_v35  ;;  %v1339_v51 = vadd.f32 %v1338_v42, %v1337_v40 }
 0x49a   :  { %v1358_v53 = vsel %vm1329_vm15, %v1325_v48, 0.0  ;;  %v1344_v61 = vsel %vm1329_vm15, %v1323_v49, 0.0 }
 0x49b   :  { %v1333_v44 = vrot.slane %v1332_v31, 2  ;;  %v1340_v0 = vrot.slane %v1339_v51, 2  ;;  %v1359_v5 = vrot.slane %v1358_v53, 4  ;;  %v1345_v6 = vrot.slane %v1344_v61, 4  ;;  %v1313_v7 = vpop.permute.xlu0 %1312  ;;  %v1292_v8 = vpop.permute.xlu1 %1291 }
 0x49c   :  { %v1327_v58 = vmul.f32 %v1313_v7, %v2542_v15  ;;  %v1324_v9 = vmul.f32 %v1292_v8, %v2526_v37 }
 0x49d   :  { %v1334_v56 = vadd.f32 %v1333_v44, %v1332_v31  ;;  %v1341_v10 = vadd.f32 %v1340_v0, %v1339_v51  ;;  %v1360_v4 = vadd.f32 %v1359_v5, %v1358_v53  ;;  %v1346_v12 = vadd.f32 %v1345_v6, %v1344_v61 }
 0x49e   :  { %v1372_v14 = vsel %vm1329_vm15, %v1327_v58, 0.0  ;;  %v1351_v27 = vsel %vm1329_vm15, %v1324_v9, 0.0 }
 0x49f   :  { %v1335_v18 = vrot.slane %v1334_v56, 1  ;;  %v1342_v1 = vrot.slane %v1341_v10, 1  ;;  %v1361_v19 = vrot.slane %v1360_v4, 2  ;;  %v1347_v20 = vrot.slane %v1346_v12, 2  ;;  %v1320_v22 = vpop.permute.xlu0 %1319  ;;  %v1306_v23 = vpop.permute.xlu1 %1305 }
 0x4a0   :  { %v1373_v24 = vrot.slane %v1372_v14, 4  ;;  %v1352_v36 = vrot.slane %v1351_v27, 4  ;;  %v1328_v25 = vmul.f32 %v1320_v22, %v2544_v16  ;;  %v1326_v26 = vmul.f32 %v1306_v23, %v2536_v11 }
 0x4a1   :  { %v1336_v28 = vadd.f32 %v1335_v18, %v1334_v56  ;;  %v1343_v32 = vadd.f32 %v1342_v1, %v1341_v10  ;;  %v1362_v33 = vadd.f32 %v1361_v19, %v1360_v4  ;;  %v1348_v34 = vadd.f32 %v1347_v20, %v1346_v12 }
 0x4a2   :  { %v1374_v35 = vadd.f32 %v1373_v24, %v1372_v14  ;;  %v1353_v40 = vadd.f32 %v1352_v36, %v1351_v27  ;;  %v1379_v41 = vsel %vm1329_vm15, %v1328_v25, 0.0  ;;  %v1365_v42 = vsel %vm1329_vm15, %v1326_v26, 0.0 }
 0x4a3   :  { %v1363_v43 = vrot.slane %v1362_v33, 1  ;;  %v1349_v47 = vrot.slane %v1348_v34, 1  ;;  %v1380_v48 = vrot.slane %v1379_v41, 4  ;;  %v1691_v49 = vpop.permute.xlu0 %1690  ;;  %v1698_v31 = vpop.permute.xlu1 %1697  ;;  %v1366_v61 = vrot.slane %v1365_v42, 4 }
 0x4a4   :  { %v1375_v51 = vrot.slane %v1374_v35, 2  ;;  %v1354_v53 = vrot.slane %v1353_v40, 2  ;;  %v1741_v44 = vmul.f32 %v1691_v49, %v2522_v30  ;;  %v1397_v0 = vsel %vm309_vm3, %v1343_v32, %v1336_v28 }
 0x4a5   :  { %v1350_v5 = vadd.f32 %v1349_v47, %v1348_v34  ;;  %v1381_v6 = vadd.f32 %v1380_v48, %v1379_v41  ;;  %v1742_v7 = vmul.f32 %v1698_v31, %v2520_v29  ;;  %v1367_v9 = vadd.f32 %v1366_v61, %v1365_v42 }
 0x4a6   :  { %v1376_v8 = vadd.f32 %v1375_v51, %v1374_v35  ;;  %v1355_v58 = vadd.f32 %v1354_v53, %v1353_v40  ;;  %v1750_v56 = vsel %vm1749_vm0, %v1741_v44, 0.0  ;;  %v1364_v10 = vadd.f32 %v1363_v43, %v1362_v33 }
 0x4a7   :  { %v1382_v4 = vrot.slane %v1381_v6, 2  ;;  %v1751_v12 = vrot.slane %v1750_v56, 4  ;;  %v1757_v14 = vsel %vm1749_vm0, %v1742_v7, 0.0  ;;  %v1705_v27 = vpop.permute.xlu0 %1704  ;;  %v1712_v18 = vpop.permute.xlu1 %1711  ;;  %v1368_v20 = vrot.slane %v1367_v9, 2 }
 0x4a8   :  { %v1377_v1 = vrot.slane %v1376_v8, 1  ;;  %v1356_v19 = vrot.slane %v1355_v58, 1  ;;  %v1758_v22 = vrot.slane %v1757_v14, 4  ;;  %v1743_v36 = vmul.f32 %v1705_v27, %v2528_v38 }
 0x4a9   :  { %v1383_v23 = vadd.f32 %v1382_v4, %v1381_v6  ;;  %v1752_v24 = vadd.f32 %v1751_v12, %v1750_v56  ;;  %v1744_v25 = vmul.f32 %v1712_v18, %v2526_v37  ;;  %v1398_v26 = vsel %vm311_vm4, %v1350_v5, %v1397_v0 }
 0x4aa   :  { %v1357_v28 = vadd.f32 %v1356_v19, %v1355_v58  ;;  %v1369_v32 = vadd.f32 %v1368_v20, %v1367_v9  ;;  %v1759_v33 = vadd.f32 %v1758_v22, %v1757_v14  ;;  %v1764_v40 = vsel %vm1749_vm0, %v1743_v36, 0.0 }
 0x4ab   :  { %v1384_v34 = vrot.slane %v1383_v23, 1  ;;  %v1753_v35 = vrot.slane %v1752_v24, 2  ;;  %v1771_v41 = vsel %vm1749_vm0, %v1744_v25, 0.0  ;;  %v1719_v42 = vpop.permute.xlu0 %1718  ;;  %v1726_v43 = vpop.permute.xlu1 %1725  ;;  %v1378_v47 = vadd.f32 %v1377_v1, %v1376_v8 }
 0x4ac   :  { %v1370_v48 = vrot.slane %v1369_v32, 1  ;;  %v1760_v49 = vrot.slane %v1759_v33, 2  ;;  %v1765_v31 = vrot.slane %v1764_v40, 4  ;;  %v1399_v51 = vsel %vm313_vm5, %v1357_v28, %v1398_v26 }
 0x4ad   :  { %v1754_v53 = vadd.f32 %v1753_v35, %v1752_v24  ;;  %v1772_v61 = vrot.slane %v1771_v41, 4  ;;  %v1745_v44 = vmul.f32 %v1719_v42, %v2534_v54  ;;  %v1385_v0 = vadd.f32 %v1384_v34, %v1383_v23 }
 0x4ae   :  { %v1761_v5 = vadd.f32 %v1760_v49, %v1759_v33  ;;  %v1766_v6 = vadd.f32 %v1765_v31, %v1764_v40  ;;  %v1746_v7 = vmul.f32 %v1726_v43, %v2536_v11  ;;  %v1371_v58 = vadd.f32 %v1370_v48, %v1369_v32 }
 0x4af   :  { %v1755_v9 = vrot.slane %v1754_v53, 1  ;;  %v1773_v56 = vadd.f32 %v1772_v61, %v1771_v41  ;;  %v1778_v4 = vsel %vm1749_vm0, %v1745_v44, 0.0  ;;  %v1740_v8 = vpop.permute.xlu0 %1739  ;;  %v1733_v12 = vpop.permute.xlu1 %1732  ;;  %v1400_v23 = vsel %vm315_vm6, %v1364_v10, %v1399_v51 }
 0x4b0   :  { %v1762_v14 = vrot.slane %v1761_v5, 1  ;;  %v1767_v27 = vrot.slane %v1766_v6, 2  ;;  %v1779_v18 = vrot.slane %v1778_v4, 4  ;;  %v1785_v1 = vsel %vm1749_vm0, %v1746_v7, 0.0 }
 0x4b1   :  { %v1774_v19 = vrot.slane %v1773_v56, 2  ;;  %v1786_v20 = vrot.slane %v1785_v1, 4  ;;  %v1748_v22 = vmul.f32 %v1740_v8, %v2544_v16  ;;  %v1756_v24 = vadd.f32 %v1755_v9, %v1754_v53 }
 0x4b2   :  { %v1768_v36 = vadd.f32 %v1767_v27, %v1766_v6  ;;  %v1780_v25 = vadd.f32 %v1779_v18, %v1778_v4  ;;  %v1747_v26 = vmul.f32 %v1733_v12, %v2542_v15  ;;  %v1401_v34 = vsel %vm317_vm7, %v1371_v58, %v1400_v23 }
 0x4b3   :  { %v1775_v28 = vadd.f32 %v1774_v19, %v1773_v56  ;;  %v1787_v32 = vadd.f32 %v1786_v20, %v1785_v1  ;;  %v1799_v33 = vsel %vm1749_vm0, %v1748_v22, 0.0  ;;  %v1763_v35 = vadd.f32 %v1762_v14, %v1761_v5 }
 0x4b4   :  { %v1769_v40 = vrot.slane %v1768_v36, 1  ;;  %v1781_v41 = vrot.slane %v1780_v25, 2  ;;  %v1800_v42 = vrot.slane %v1799_v33, 4  ;;  %v1792_v49 = vsel %vm1749_vm0, %v1747_v26, 0.0 }
 0x4b5   :  { %v1776_v43 = vrot.slane %v1775_v28, 1  ;;  %v1788_v48 = vrot.slane %v1787_v32, 2  ;;  %v1402_v10 = vsel %vm319_vm8, %v1378_v47, %v1401_v34  ;;  %v1793_v61 = vrot.slane %v1792_v49, 4 }
 0x4b6   :  { %v1770_v31 = vadd.f32 %v1769_v40, %v1768_v36  ;;  %v1782_v51 = vadd.f32 %v1781_v41, %v1780_v25  ;;  %v1801_v53 = vadd.f32 %v1800_v42, %v1799_v33  ;;  %v1403_v6 = vsel %vm321_vm9, %v1385_v0, %v1402_v10 }
 0x4b7   :  { %v1789_v44 = vadd.f32 %v1788_v48, %v1787_v32  ;;  %v1794_v58 = vadd.f32 %v1793_v61, %v1792_v49  ;;  %1404 = vrot.lane.b32.xlu0 %v1403_v6, %s2087_s10  ;;  %v1817_v5 = vsel %vm309_vm3, %v1763_v35, %v1756_v24  ;;  %v1777_v56 = vadd.f32 %v1776_v43, %v1775_v28 }
 0x4b8   :  { %v1783_v7 = vrot.slane %v1782_v51, 1  ;;  %v1802_v9 = vrot.slane %v1801_v53, 2  ;;  %v427_v8 = vrot.slane %v2464_v60, %v2196_v21  ;;  %v1818_v47 = vsel %vm311_vm4, %v1770_v31, %v1817_v5 }
 0x4b9   :  { %v1790_v4 = vrot.slane %v1789_v44, 1  ;;  %v1795_v27 = vrot.slane %v1794_v58, 2  ;;  %v1819_v0 = vsel %vm313_vm5, %v1777_v56, %v1818_v47 }
 0x4ba   :  { %v1784_v12 = vadd.f32 %v1783_v7, %v1782_v51  ;;  %v1803_v14 = vadd.f32 %v1802_v9, %v1801_v53 }
 0x4bb   :  { %v1796_v1 = vadd.f32 %v1795_v27, %v1794_v58  ;;  %429 = vbcast.lane.b32.xlu0 %v427_v8, 256  ;;  %v1791_v19 = vadd.f32 %v1790_v4, %v1789_v44 }
 0x4bc   :  { %v1804_v18 = vrot.slane %v1803_v14, 1  ;;  %v1820_v24 = vsel %vm315_vm6, %v1784_v12, %v1819_v0 }
 0x4bd   :  { %v2605_v20 = vpop.f32.mrb[2].mxu1  ;;  %v1797_v22 = vrot.slane %v1796_v1, 1  ;;  %v1821_v26 = vsel %vm317_vm7, %v1791_v19, %v1820_v24 }
 0x4be   :  { %v1969_v23 = vpop.f32.mrb[3].mxu1  ;;  %v1805_v36 = vadd.f32 %v1804_v18, %v1803_v14 }
 0x4bf   :  { %v1798_v25 = vadd.f32 %v1797_v22, %v1796_v1  ;;  %443 = vbcast.lane.b32.xlu0 %v441_v45, 256 }
 0x4c1   :  { %v1056_v21 = vpop.f32.mrb[4].mxu1  ;;  %v1822_v28 = vsel %vm319_vm8, %v1798_v25, %v1821_v26 }
 0x4c2   :  { %v1979_v32 = vpop.f32.mrb[5].mxu1  ;;  %v1823_v33 = vsel %vm321_vm9, %v1805_v36, %v1822_v28 }
 0x4c3   :  { %457 = vbcast.lane.b32.xlu0 %v455_v50, 256  ;;  %1824 = vrot.lane.b32.xlu1 %v1823_v33, %s2088_s13 }
 0x4c7   :  { %471 = vbcast.lane.b32.xlu0 %v469_v13, 256  ;;  %436 = vbcast.lane.b32.xlu1 %v434_v2, 256 }
 0x4cb   :  { %450 = vbcast.lane.b32.xlu1 %v448_v39, 256 }
 0x4cf   :  { %464 = vbcast.lane.b32.xlu1 %v462_v55, 256 }
 0x4d3   :  { %478 = vbcast.lane.b32.xlu1 %v476_v3, 256 }
 0x4e6   :  { %v985_v17 = vpop.permute.xlu1 %984 }
 0x4e7   :  { %v1057_v57 = vadd.f32 %v1056_v21, %v985_v17 }
 0x4e9   :  { %1061 = vrot.lane.b32.xlu0 %v1057_v57, %s2077_s15  ;;  %s2098_s15 = smov 24  }
 0x4f2   :  { %v1476_v62 = vpop.f32.mrb[6].mxu1 }
 0x4f3   :  { %v1989_v45 = vpop.f32.mrb[7].mxu1 }
 0x4f6   :  { %v1896_v46 = vpop.f32.mrb[8].mxu1 }
 0x4f7   :  { %v1999_v50 = vpop.f32.mrb[9].mxu1 }
 0x529   :  { %v1405_v13 = vpop.permute.xlu0 %1404 }
 0x52a   :  { %v1477_v2 = vadd.f32 %v1476_v62, %v1405_v13 }
 0x52c   :  { %1481 = vrot.lane.b32.xlu1 %v1477_v2, %s2097_s0 }
 0x52d   :  { %v430_v52 = vpop.permute.xlu0 %429 }
 0x52e   :  { %v480_v59 = vmul.f32 %v430_v52, %v2522_v30 }
 0x530   :  { %v488_v39 = vsel %vm240_vm2, %v480_v59, 0.0 }
 0x531   :  { %v444_v55 = vpop.permute.xlu0 %443  ;;  %v489_v63 = vrot.slane %v488_v39, 4 }
 0x532   :  { %v482_v60 = vmul.f32 %v444_v55, %v2528_v38 }
 0x533   :  { %v490_v43 = vadd.f32 %v489_v63, %v488_v39 }
 0x534   :  { %v502_v3 = vsel %vm240_vm2, %v482_v60, 0.0 }
 0x535   :  { %v458_v34 = vpop.permute.xlu0 %457  ;;  %v1825_v35 = vpop.permute.xlu1 %1824  ;;  %v503_v40 = vrot.slane %v502_v3, 4  ;;  %v491_v53 = vrot.slane %v490_v43, 2 }
 0x536   :  { %v484_v41 = vmul.f32 %v458_v34, %v2534_v54  ;;  %v1897_v42 = vadd.f32 %v1896_v46, %v1825_v35 }
 0x537   :  { %v504_v10 = vadd.f32 %v503_v40, %v502_v3  ;;  %v492_v56 = vadd.f32 %v491_v53, %v490_v43 }
 0x538   :  { %v516_v48 = vsel %vm240_vm2, %v484_v41, 0.0  ;;  %1901 = vrot.lane.b32.xlu0 %v1897_v42, %s2098_s15 }
 0x539   :  { %v472_v30 = vpop.permute.xlu0 %471  ;;  %v437_v49 = vpop.permute.xlu1 %436  ;;  %v517_v31 = vrot.slane %v516_v48, 4  ;;  %v505_v7 = vrot.slane %v504_v10, 2  ;;  %v493_v1 = vrot.slane %v492_v56, 1 }
 0x53a   :  { %v486_v38 = vmul.f32 %v472_v30, %v2542_v15  ;;  %v481_v51 = vmul.f32 %v437_v49, %v2520_v29 }
 0x53b   :  { %v518_v9 = vadd.f32 %v517_v31, %v516_v48  ;;  %v506_v29 = vadd.f32 %v505_v7, %v504_v10  ;;  %v494_v32 = vadd.f32 %v493_v1, %v492_v56 }
 0x53c   :  { %v530_v61 = vsel %vm240_vm2, %v486_v38, 0.0  ;;  %v495_v44 = vsel %vm240_vm2, %v481_v51, 0.0 }
 0x53d   :  { %v496_v54 = vrot.slane %v495_v44, 4  ;;  %v451_v6 = vpop.permute.xlu1 %450  ;;  %v531_v58 = vrot.slane %v530_v61, 4  ;;  %v519_v14 = vrot.slane %v518_v9, 2  ;;  %v507_v25 = vrot.slane %v506_v29, 1 }
 0x53e   :  { %v483_v5 = vmul.f32 %v451_v6, %v2526_v37 }
 0x53f   :  { %v497_v4 = vadd.f32 %v496_v54, %v495_v44  ;;  %v532_v27 = vadd.f32 %v531_v58, %v530_v61  ;;  %v520_v21 = vadd.f32 %v519_v14, %v518_v9  ;;  %v508_v13 = vadd.f32 %v507_v25, %v506_v29 }
 0x540   :  { %v509_v8 = vsel %vm240_vm2, %v483_v5, 0.0 }
 0x541   :  { %v498_v47 = vrot.slane %v497_v4, 2  ;;  %v510_v15 = vrot.slane %v509_v8, 4  ;;  %v465_v12 = vpop.permute.xlu1 %464  ;;  %v533_v26 = vrot.slane %v532_v27, 2  ;;  %v521_v2 = vrot.slane %v520_v21, 1 }
 0x542   :  { %v485_v18 = vmul.f32 %v465_v12, %v2536_v11 }
 0x543   :  { %v499_v0 = vadd.f32 %v498_v47, %v497_v4  ;;  %v511_v19 = vadd.f32 %v510_v15, %v509_v8  ;;  %v534_v52 = vadd.f32 %v533_v26, %v532_v27  ;;  %v522_v34 = vadd.f32 %v521_v2, %v520_v21 }
 0x544   :  { %v523_v22 = vsel %vm240_vm2, %v485_v18, 0.0 }
 0x545   :  { %v500_v23 = vrot.slane %v499_v0, 1  ;;  %v512_v24 = vrot.slane %v511_v19, 2  ;;  %v524_v37 = vrot.slane %v523_v22, 4  ;;  %v479_v36 = vpop.permute.xlu1 %478  ;;  %v535_v35 = vrot.slane %v534_v52, 1 }
 0x546   :  { %v487_v28 = vmul.f32 %v479_v36, %v2544_v16 }
 0x547   :  { %v501_v33 = vadd.f32 %v500_v23, %v499_v0  ;;  %v513_v17 = vadd.f32 %v512_v24, %v511_v19  ;;  %v525_v57 = vadd.f32 %v524_v37, %v523_v22  ;;  %v536_v30 = vadd.f32 %v535_v35, %v534_v52 }
 0x548   :  { %v537_v11 = vsel %vm240_vm2, %v487_v28, 0.0 }
 0x549   :  { %v555_v62 = vsel %vm309_vm3, %v501_v33, %v494_v32  ;;  %v514_v45 = vrot.slane %v513_v17, 1  ;;  %v526_v46 = vrot.slane %v525_v57, 2  ;;  %v538_v50 = vrot.slane %v537_v11, 4 }
 0x54a   :  { %v556_v60 = vsel %vm311_vm4, %v508_v13, %v555_v62 }
 0x54b   :  { %v515_v59 = vadd.f32 %v514_v45, %v513_v17  ;;  %v527_v39 = vadd.f32 %v526_v46, %v525_v57  ;;  %v539_v55 = vadd.f32 %v538_v50, %v537_v11 }
 0x54d   :  { %v557_v16 = vsel %vm313_vm5, %v515_v59, %v556_v60  ;;  %v528_v63 = vrot.slane %v527_v39, 1  ;;  %v540_v3 = vrot.slane %v539_v55, 2 }
 0x54e   :  { %v558_v42 = vsel %vm315_vm6, %v522_v34, %v557_v16 }
 0x54f   :  { %v529_v40 = vadd.f32 %v528_v63, %v527_v39  ;;  %v541_v41 = vadd.f32 %v540_v3, %v539_v55 }
 0x551   :  { %v559_v43 = vsel %vm317_vm7, %v529_v40, %v558_v42  ;;  %v542_v48 = vrot.slane %v541_v41, 1 }
 0x552   :  { %v560_v10 = vsel %vm319_vm8, %v536_v30, %v559_v43 }
 0x553   :  { %v543_v49 = vadd.f32 %v542_v48, %v541_v41 }
 0x555   :  { %v561_v31 = vsel %vm321_vm9, %v543_v49, %v560_v10 }
 0x556   :  { %v633_v38 = vadd.f32 %v2605_v20, %v561_v31 }
 0x558   :  { %636 = vst.msk [vmem:[%s2681_s7] sm:$0xff] %vm240_vm2, %v633_v38 }
 0x55b   :  { %v1062_v51 = vpop.permute.xlu0 %1061 }
 0x55c   :  { %1064 = vst.msk [vmem:[%s2681_s7] sm:$0xff] %vm909_vm14, %v1062_v51 }
 0x59e   :  { %v1482_v53 = vpop.permute.xlu1 %1481 }
 0x59f   :  { %1484 = vst.msk [vmem:[%s2681_s7] sm:$0xff] %vm1329_vm15, %v1482_v53 }
 0x5aa   :  { %v1902_v61 = vpop.permute.xlu0 %1901 }
 0x5ab   :  { %1904 = vst.msk [vmem:[%s2681_s7] sm:$0xff] %vm1749_vm0, %v1902_v61 }
 0x5ac   :  { %1909 = vsyncpa [#allocation3], 1 }

</bundles_post_ra>
